<compile_context>
chip_gen: v7x
topology: tpu7x:2x2x1
jax: 0.10.0
libtpu: 0.0.40
codegen_flags: <defaults>
</compile_context>

<pallas_src>
import functools

import jax
import jax.numpy as jnp
from jax.experimental import pallas as pl
from jax.experimental.pallas import tpu as pltpu

NOISE_CH = 72
LINEAR_SIZE = 256
NUM_STAGE = 2
NUM_JOINTS = 24
OUT_FEATURES = NUM_JOINTS * 4          # 96
NEG_SLOPE = 0.01                       # nn.LeakyReLU() default
BN_EPS = 1e-5                          # nn.BatchNorm1d default

NOISE_PAD = 128                        # 72  -> 128 (lane-aligned K)
OUT_PAD = 128                          # 96  -> 128 (lane-dense output block)


def _leaky_relu(x):
    return jnp.where(x > 0, x, NEG_SLOPE * x)


# ----------------------------------------------------------------------------
# Kernel: fused 6-layer MLP on one (tile, 128) batch tile of noise.
# bf16 MXU operands, f32 accumulation, f32 elementwise.
# ----------------------------------------------------------------------------
def _gen_mlp_kernel(x_ref,
                    w1_ref, b1_ref,
                    w2_ref, b2_ref,
                    w3_ref, b3_ref,
                    w4_ref, b4_ref,
                    w5_ref, b5_ref,
                    w6_ref, b6_ref,
                    o_ref):
    def layer(h, w_ref, b_ref, act):
        y = jnp.dot(h.astype(jnp.bfloat16), w_ref[...],
                    preferred_element_type=jnp.float32) + b_ref[...]
        return _leaky_relu(y) if act else y

    h = x_ref[...]
    h = layer(h, w1_ref, b1_ref, True)
    h = layer(h, w2_ref, b2_ref, True)
    h = layer(h, w3_ref, b3_ref, True)
    h = layer(h, w4_ref, b4_ref, True)
    h = layer(h, w5_ref, b5_ref, True)
    o_ref[...] = layer(h, w6_ref, b6_ref, False).astype(o_ref.dtype)


# ----------------------------------------------------------------------------
# Parameters (PyTorch-style init; random eval-mode BN statistics so the
# BN-folding path is actually exercised).
# ----------------------------------------------------------------------------
def init_params(key, dtype=jnp.float32):
    def linear(k, fan_in, fan_out):
        kw, kb = jax.random.split(k)
        bound = 1.0 / (fan_in ** 0.5)
        w = jax.random.uniform(kw, (fan_in, fan_out), dtype, -bound, bound)
        b = jax.random.uniform(kb, (fan_out,), dtype, -bound, bound)
        return w, b

    def bn(k, n):
        kg, kb, km, kv = jax.random.split(k, 4)
        gamma = jax.random.uniform(kg, (n,), dtype, 0.5, 1.5)
        beta = 0.1 * jax.random.normal(kb, (n,), dtype)
        mean = 0.1 * jax.random.normal(km, (n,), dtype)
        var = jax.random.uniform(kv, (n,), dtype, 0.5, 1.5)
        return gamma, beta, mean, var

    keys = jax.random.split(key, 2 + 4 * NUM_STAGE + 1)
    params = {
        "w1": linear(keys[0], NOISE_CH, LINEAR_SIZE),
        "bn1": bn(keys[1], LINEAR_SIZE),
        "stages": [],
    }
    ki = 2
    for _ in range(NUM_STAGE):
        stage = {
            "w1": linear(keys[ki], LINEAR_SIZE, LINEAR_SIZE),
            "bn1": bn(keys[ki + 1], LINEAR_SIZE),
            "w2": linear(keys[ki + 2], LINEAR_SIZE, LINEAR_SIZE),
            "bn2": bn(keys[ki + 3], LINEAR_SIZE),
        }
        ki += 4
        params["stages"].append(stage)
    params["w_out"] = linear(keys[ki], LINEAR_SIZE, OUT_FEATURES)
    return params


def _fold_linear_bn(w, b, bn_params):
    """Fold eval-mode BatchNorm into the preceding Linear (exact algebra)."""
    gamma, beta, mean, var = bn_params
    scale = gamma / jnp.sqrt(var + BN_EPS)
    return w * scale[None, :], b * scale + (beta - mean * scale)


def _pack_kernel_weights(params):
    """Fold BN, pad to lane-aligned shapes, flatten to the kernel arg order.

    Weights are stored bf16 (MXU-native operands); biases stay f32.
    """
    layers = []

    w, b = _fold_linear_bn(*params["w1"], params["bn1"])
    w = jnp.pad(w, ((0, NOISE_PAD - NOISE_CH), (0, 0)))      # zero K-pad rows
    layers.append((w, b))

    for stage in params["stages"]:
        layers.append(_fold_linear_bn(*stage["w1"], stage["bn1"]))
        layers.append(_fold_linear_bn(*stage["w2"], stage["bn2"]))

    w, b = params["w_out"]
    w = jnp.pad(w, ((0, 0), (0, OUT_PAD - OUT_FEATURES)))    # zero N-pad cols
    b = jnp.pad(b, (0, OUT_PAD - OUT_FEATURES))
    layers.append((w, b))

    flat = []
    for w, b in layers:
        flat.append(w.astype(jnp.bfloat16))                  # MXU operands
        flat.append(b.reshape(1, -1).astype(jnp.float32))    # f32 bias add
    return flat


# ----------------------------------------------------------------------------
# Tiling: big tiles to amortize per-grid-step overhead, but keep >= 2 grid
# steps when the batch allows it so v7x's two TensorCores both get work.
# ----------------------------------------------------------------------------
def _tiling(n, tile_n=1024):
    n8 = pl.cdiv(n, 8) * 8
    tile = min(tile_n, n8)
    if n8 >= 16 and n8 <= tile:
        # Whole batch would fit one tile -> split in two for megacore (v7x).
        tile = max(8, pl.cdiv(n8 // 2, 8) * 8)
    n_pad = pl.cdiv(n, tile) * tile
    return tile, n_pad


# ----------------------------------------------------------------------------
# Pallas wrapper for the MLP trunk (operates on the padded noise layout).
# ----------------------------------------------------------------------------
@functools.partial(jax.jit, static_argnames=("tile",))
def ba_generator_mlp(noise_pad, flat_params, tile):
    """noise_pad (n_pad, 128) -> padded (n_pad, 128) generator features."""
    n_pad, k = noise_pad.shape
    assert k == NOISE_PAD and n_pad % tile == 0

    def full_spec(arr):
        # Whole-array block, same block index every grid step -> weights and
        # biases are DMA'd into VMEM once and stay resident.
        return pl.BlockSpec(arr.shape, lambda i: (0,) * arr.ndim)

    in_specs = [pl.BlockSpec((tile, NOISE_PAD), lambda i: (i, 0))]
    in_specs += [full_spec(p) for p in flat_params]

    return pl.pallas_call(
        _gen_mlp_kernel,
        out_shape=jax.ShapeDtypeStruct((n_pad, OUT_PAD), jnp.float32),
        grid_spec=pltpu.PrefetchScalarGridSpec(
            num_scalar_prefetch=0,
            grid=(n_pad // tile,),
            in_specs=in_specs,
            # Lane-dense (tile, 128) output block; the real 96 columns are
            # sliced off inside the (XLA-fused) postprocess.
            out_specs=pl.BlockSpec((tile, OUT_PAD), lambda i: (i, 0)),
        ),
        compiler_params=pltpu.CompilerParams(
            dimension_semantics=("parallel",),   # megacore-shardable on v7x
            vmem_limit_bytes=32 << 20,
        ),
    )(noise_pad, *flat_params)


def _postprocess(y, n):
    """Axis-angle postprocess. Accepts the padded kernel output (or an exact
    (n, 96) array) and fuses the row/col slice with the tiny elementwise work;
    the (24, 4) layout is not lane-aligned, so this stays in plain JAX."""
    y = y[:n, :OUT_FEATURES].reshape(n, NUM_JOINTS, 4)
    axis = y[..., :3]
    axis = axis / jnp.linalg.norm(axis, axis=-1, keepdims=True)
    theta = y[..., 3:4]
    out = axis * theta
    out = out.at[:, 0].multiply(3.14 * 2)
    return out


def ba_generator_forward(inputs_3d, params, key, tile_n=1024):
    """Matches BAGenerator.forward (eval-mode BatchNorm)."""
    n = inputs_3d.shape[0]
    tile, n_pad = _tiling(n, tile_n)
    # Noise is generated directly in the kernel's padded layout; the random
    # values in columns 72-127 hit zero-padded W1 rows (exactly 0 in the f32
    # accumulation) and padded batch rows are sliced off after the kernel.
    noise_pad = jax.random.normal(key, (n_pad, NOISE_PAD), dtype=jnp.float32)
    flat = _pack_kernel_weights(params)
    y_pad = ba_generator_mlp(noise_pad, flat, tile=tile)
    out = _postprocess(y_pad, n)
    return out, y_pad[:n, :OUT_FEATURES], noise_pad[:n, :NOISE_CH]


# ----------------------------------------------------------------------------
# References.
#   _reference_mlp      : pure-f32 mirror of the PyTorch forward (unfused BN).
#   _reference_mlp_bf16 : mirror of the kernel's exact math (folded BN, bf16
#                         operands, f32 accumulation) for a tight check.
# ----------------------------------------------------------------------------
def _reference_mlp(noise, params):
    def bn_apply(x, bnp):
        gamma, beta, mean, var = bnp
        return (x - mean) / jnp.sqrt(var + BN_EPS) * gamma + beta

    w, b = params["w1"]
    y = _leaky_relu(bn_apply(noise @ w + b, params["bn1"]))
    for stage in params["stages"]:
        w, b = stage["w1"]
        y = _leaky_relu(bn_apply(y @ w + b, stage["bn1"]))
        w, b = stage["w2"]
        y = _leaky_relu(bn_apply(y @ w + b, stage["bn2"]))
    w, b = params["w_out"]
    return y @ w + b


def _reference_mlp_bf16(noise, flat_params):
    h = jnp.pad(noise.astype(jnp.float32),
                ((0, 0), (0, NOISE_PAD - NOISE_CH)))
    n_layers = len(flat_params) // 2
    for li in range(n_layers):
        w, b = flat_params[2 * li], flat_params[2 * li + 1]
        y = jnp.dot(h.astype(jnp.bfloat16), w,
                    preferred_element_type=jnp.float32) + b
        h = _leaky_relu(y) if li < n_layers - 1 else y
    return h[:, :OUT_FEATURES]


if __name__ == "__main__":
    key = jax.random.PRNGKey(0)
    k_in, k_params, k_noise = jax.random.split(key, 3)

    batch = 64
    inputs_3d = jax.random.normal(k_in, (batch, 16, 3), dtype=jnp.float32)
    params = init_params(k_params)

    out, y_mlp, noise = ba_generator_forward(inputs_3d, params, k_noise)
    out = jax.block_until_ready(out)

    assert out.shape == (batch, NUM_JOINTS, 3), out.shape
    assert bool(jnp.all(jnp.isfinite(out)))

    # Tight check: kernel vs an XLA implementation of the exact same math
    # (folded BN, bf16 operands, f32 accumulation).
    flat = _pack_kernel_weights(params)
    ref_bf16 = _reference_mlp_bf16(noise, flat)
    assert jnp.allclose(y_mlp, ref_bf16, atol=1e-3, rtol=1e-3), (
        float(jnp.max(jnp.abs(y_mlp - ref_bf16))))

    # Semantics check: kernel vs the f32 PyTorch-style forward (unfused BN);
    # tolerance sized for 6 chained bf16-operand matmuls.
    ref_y = _reference_mlp(noise, params)
    assert jnp.allclose(y_mlp, ref_y, atol=5e-2, rtol=5e-2), (
        float(jnp.max(jnp.abs(y_mlp - ref_y))))

    # Final output: axis-normalization can amplify tiny errors when a joint's
    # axis norm is small, so gate on mean abs error rather than elementwise max.
    ref_out = _postprocess(ref_y, batch)
    mean_err = float(jnp.mean(jnp.abs(out - ref_out)))
    assert mean_err < 5e-2, mean_err

    print("KERNEL_OK")
</pallas_src>

<mosaic_0001>
module attributes {stable_mosaic.version = 11 : i64} {
  func.func @_gen_mlp_kernel(%arg0: i32, %arg1: memref<32x128xf32, #tpu.memory_space<vmem>>, %arg2: memref<128x256xbf16, #tpu.memory_space<vmem>>, %arg3: memref<1x256xf32, #tpu.memory_space<vmem>>, %arg4: memref<256x256xbf16, #tpu.memory_space<vmem>>, %arg5: memref<1x256xf32, #tpu.memory_space<vmem>>, %arg6: memref<256x256xbf16, #tpu.memory_space<vmem>>, %arg7: memref<1x256xf32, #tpu.memory_space<vmem>>, %arg8: memref<256x256xbf16, #tpu.memory_space<vmem>>, %arg9: memref<1x256xf32, #tpu.memory_space<vmem>>, %arg10: memref<256x256xbf16, #tpu.memory_space<vmem>>, %arg11: memref<1x256xf32, #tpu.memory_space<vmem>>, %arg12: memref<256x128xbf16, #tpu.memory_space<vmem>>, %arg13: memref<1x128xf32, #tpu.memory_space<vmem>>, %arg14: memref<32x128xf32, #tpu.memory_space<vmem>>) attributes {dimension_semantics = [#tpu.dimension_semantics<parallel>], iteration_bounds = array<i64: 2>, scalar_prefetch = 0 : i64, scratch_operands = 0 : i64, tpu.core_type = #tpu.core_type<tc>, window_params = [{transform_indices = @transform_0, window_bounds = array<i64: 32, 128>}, {pipeline_mode = #tpu.pipeline_mode<synchronous>, transform_indices = @transform_1, window_bounds = array<i64: 128, 256>}, {pipeline_mode = #tpu.pipeline_mode<synchronous>, transform_indices = @transform_2, window_bounds = array<i64: 1, 256>}, {pipeline_mode = #tpu.pipeline_mode<synchronous>, transform_indices = @transform_3, window_bounds = array<i64: 256, 256>}, {pipeline_mode = #tpu.pipeline_mode<synchronous>, transform_indices = @transform_4, window_bounds = array<i64: 1, 256>}, {pipeline_mode = #tpu.pipeline_mode<synchronous>, transform_indices = @transform_5, window_bounds = array<i64: 256, 256>}, {pipeline_mode = #tpu.pipeline_mode<synchronous>, transform_indices = @transform_6, window_bounds = array<i64: 1, 256>}, {pipeline_mode = #tpu.pipeline_mode<synchronous>, transform_indices = @transform_7, window_bounds = array<i64: 256, 256>}, {pipeline_mode = #tpu.pipeline_mode<synchronous>, transform_indices = @transform_8, window_bounds = array<i64: 1, 256>}, {pipeline_mode = #tpu.pipeline_mode<synchronous>, transform_indices = @transform_9, window_bounds = array<i64: 256, 256>}, {pipeline_mode = #tpu.pipeline_mode<synchronous>, transform_indices = @transform_10, window_bounds = array<i64: 1, 256>}, {pipeline_mode = #tpu.pipeline_mode<synchronous>, transform_indices = @transform_11, window_bounds = array<i64: 256, 128>}, {pipeline_mode = #tpu.pipeline_mode<synchronous>, transform_indices = @transform_12, window_bounds = array<i64: 1, 128>}, {transform_indices = @transform_13, window_bounds = array<i64: 32, 128>}]} {
    %c0 = arith.constant 0 : index
    %c0_0 = arith.constant 0 : index
    %0 = vector.load %arg1[%c0, %c0_0] : memref<32x128xf32, #tpu.memory_space<vmem>>, vector<32x128xf32>
    %1 = arith.truncf %0 : vector<32x128xf32> to vector<32x128xbf16>
    %c0_1 = arith.constant 0 : index
    %c0_2 = arith.constant 0 : index
    %2 = vector.load %arg2[%c0_1, %c0_2] : memref<128x256xbf16, #tpu.memory_space<vmem>>, vector<128x256xbf16>
    %cst = arith.constant dense<0.000000e+00> : vector<32x256xf32>
    %3 = tpu.matmul %1, %2, %cst {dimension_numbers = #tpu.dot_dimension_numbers<[1], [0], [0], [1], [0, 0, 1, 1], [], []>} : vector<32x128xbf16>, vector<128x256xbf16>, vector<32x256xf32> -> vector<32x256xf32>
    %c0_3 = arith.constant 0 : index
    %c0_4 = arith.constant 0 : index
    %4 = vector.load %arg3[%c0_3, %c0_4] : memref<1x256xf32, #tpu.memory_space<vmem>>, vector<1x256xf32>
    %5 = vector.broadcast %4 : vector<1x256xf32> to vector<32x256xf32>
    %6 = arith.addf %3, %5 : vector<32x256xf32>
    %cst_5 = arith.constant 0.000000e+00 : f32
    %7 = vector.broadcast %cst_5 : f32 to vector<32x256xf32>
    %8 = arith.cmpf ogt, %6, %7 : vector<32x256xf32>
    %cst_6 = arith.constant 0.00999999977 : f32
    %9 = vector.broadcast %cst_6 : f32 to vector<32x256xf32>
    %10 = arith.mulf %9, %6 : vector<32x256xf32>
    %11 = arith.select %8, %6, %10 : vector<32x256xi1>, vector<32x256xf32>
    %12 = arith.truncf %11 : vector<32x256xf32> to vector<32x256xbf16>
    %c0_7 = arith.constant 0 : index
    %c0_8 = arith.constant 0 : index
    %13 = vector.load %arg4[%c0_7, %c0_8] : memref<256x256xbf16, #tpu.memory_space<vmem>>, vector<256x256xbf16>
    %cst_9 = arith.constant dense<0.000000e+00> : vector<32x256xf32>
    %14 = tpu.matmul %12, %13, %cst_9 {dimension_numbers = #tpu.dot_dimension_numbers<[1], [0], [0], [1], [0, 0, 1, 1], [], []>} : vector<32x256xbf16>, vector<256x256xbf16>, vector<32x256xf32> -> vector<32x256xf32>
    %c0_10 = arith.constant 0 : index
    %c0_11 = arith.constant 0 : index
    %15 = vector.load %arg5[%c0_10, %c0_11] : memref<1x256xf32, #tpu.memory_space<vmem>>, vector<1x256xf32>
    %16 = vector.broadcast %15 : vector<1x256xf32> to vector<32x256xf32>
    %17 = arith.addf %14, %16 : vector<32x256xf32>
    %cst_12 = arith.constant 0.000000e+00 : f32
    %18 = vector.broadcast %cst_12 : f32 to vector<32x256xf32>
    %19 = arith.cmpf ogt, %17, %18 : vector<32x256xf32>
    %cst_13 = arith.constant 0.00999999977 : f32
    %20 = vector.broadcast %cst_13 : f32 to vector<32x256xf32>
    %21 = arith.mulf %20, %17 : vector<32x256xf32>
    %22 = arith.select %19, %17, %21 : vector<32x256xi1>, vector<32x256xf32>
    %23 = arith.truncf %22 : vector<32x256xf32> to vector<32x256xbf16>
    %c0_14 = arith.constant 0 : index
    %c0_15 = arith.constant 0 : index
    %24 = vector.load %arg6[%c0_14, %c0_15] : memref<256x256xbf16, #tpu.memory_space<vmem>>, vector<256x256xbf16>
    %cst_16 = arith.constant dense<0.000000e+00> : vector<32x256xf32>
    %25 = tpu.matmul %23, %24, %cst_16 {dimension_numbers = #tpu.dot_dimension_numbers<[1], [0], [0], [1], [0, 0, 1, 1], [], []>} : vector<32x256xbf16>, vector<256x256xbf16>, vector<32x256xf32> -> vector<32x256xf32>
    %c0_17 = arith.constant 0 : index
    %c0_18 = arith.constant 0 : index
    %26 = vector.load %arg7[%c0_17, %c0_18] : memref<1x256xf32, #tpu.memory_space<vmem>>, vector<1x256xf32>
    %27 = vector.broadcast %26 : vector<1x256xf32> to vector<32x256xf32>
    %28 = arith.addf %25, %27 : vector<32x256xf32>
    %cst_19 = arith.constant 0.000000e+00 : f32
    %29 = vector.broadcast %cst_19 : f32 to vector<32x256xf32>
    %30 = arith.cmpf ogt, %28, %29 : vector<32x256xf32>
    %cst_20 = arith.constant 0.00999999977 : f32
    %31 = vector.broadcast %cst_20 : f32 to vector<32x256xf32>
    %32 = arith.mulf %31, %28 : vector<32x256xf32>
    %33 = arith.select %30, %28, %32 : vector<32x256xi1>, vector<32x256xf32>
    %34 = arith.truncf %33 : vector<32x256xf32> to vector<32x256xbf16>
    %c0_21 = arith.constant 0 : index
    %c0_22 = arith.constant 0 : index
    %35 = vector.load %arg8[%c0_21, %c0_22] : memref<256x256xbf16, #tpu.memory_space<vmem>>, vector<256x256xbf16>
    %cst_23 = arith.constant dense<0.000000e+00> : vector<32x256xf32>
    %36 = tpu.matmul %34, %35, %cst_23 {dimension_numbers = #tpu.dot_dimension_numbers<[1], [0], [0], [1], [0, 0, 1, 1], [], []>} : vector<32x256xbf16>, vector<256x256xbf16>, vector<32x256xf32> -> vector<32x256xf32>
    %c0_24 = arith.constant 0 : index
    %c0_25 = arith.constant 0 : index
    %37 = vector.load %arg9[%c0_24, %c0_25] : memref<1x256xf32, #tpu.memory_space<vmem>>, vector<1x256xf32>
    %38 = vector.broadcast %37 : vector<1x256xf32> to vector<32x256xf32>
    %39 = arith.addf %36, %38 : vector<32x256xf32>
    %cst_26 = arith.constant 0.000000e+00 : f32
    %40 = vector.broadcast %cst_26 : f32 to vector<32x256xf32>
    %41 = arith.cmpf ogt, %39, %40 : vector<32x256xf32>
    %cst_27 = arith.constant 0.00999999977 : f32
    %42 = vector.broadcast %cst_27 : f32 to vector<32x256xf32>
    %43 = arith.mulf %42, %39 : vector<32x256xf32>
    %44 = arith.select %41, %39, %43 : vector<32x256xi1>, vector<32x256xf32>
    %45 = arith.truncf %44 : vector<32x256xf32> to vector<32x256xbf16>
    %c0_28 = arith.constant 0 : index
    %c0_29 = arith.constant 0 : index
    %46 = vector.load %arg10[%c0_28, %c0_29] : memref<256x256xbf16, #tpu.memory_space<vmem>>, vector<256x256xbf16>
    %cst_30 = arith.constant dense<0.000000e+00> : vector<32x256xf32>
    %47 = tpu.matmul %45, %46, %cst_30 {dimension_numbers = #tpu.dot_dimension_numbers<[1], [0], [0], [1], [0, 0, 1, 1], [], []>} : vector<32x256xbf16>, vector<256x256xbf16>, vector<32x256xf32> -> vector<32x256xf32>
    %c0_31 = arith.constant 0 : index
    %c0_32 = arith.constant 0 : index
    %48 = vector.load %arg11[%c0_31, %c0_32] : memref<1x256xf32, #tpu.memory_space<vmem>>, vector<1x256xf32>
    %49 = vector.broadcast %48 : vector<1x256xf32> to vector<32x256xf32>
    %50 = arith.addf %47, %49 : vector<32x256xf32>
    %cst_33 = arith.constant 0.000000e+00 : f32
    %51 = vector.broadcast %cst_33 : f32 to vector<32x256xf32>
    %52 = arith.cmpf ogt, %50, %51 : vector<32x256xf32>
    %cst_34 = arith.constant 0.00999999977 : f32
    %53 = vector.broadcast %cst_34 : f32 to vector<32x256xf32>
    %54 = arith.mulf %53, %50 : vector<32x256xf32>
    %55 = arith.select %52, %50, %54 : vector<32x256xi1>, vector<32x256xf32>
    %56 = arith.truncf %55 : vector<32x256xf32> to vector<32x256xbf16>
    %c0_35 = arith.constant 0 : index
    %c0_36 = arith.constant 0 : index
    %57 = vector.load %arg12[%c0_35, %c0_36] : memref<256x128xbf16, #tpu.memory_space<vmem>>, vector<256x128xbf16>
    %cst_37 = arith.constant dense<0.000000e+00> : vector<32x128xf32>
    %58 = tpu.matmul %56, %57, %cst_37 {dimension_numbers = #tpu.dot_dimension_numbers<[1], [0], [0], [1], [0, 0, 1, 1], [], []>} : vector<32x256xbf16>, vector<256x128xbf16>, vector<32x128xf32> -> vector<32x128xf32>
    %c0_38 = arith.constant 0 : index
    %c0_39 = arith.constant 0 : index
    %59 = vector.load %arg13[%c0_38, %c0_39] : memref<1x128xf32, #tpu.memory_space<vmem>>, vector<1x128xf32>
    %60 = vector.broadcast %59 : vector<1x128xf32> to vector<32x128xf32>
    %61 = arith.addf %58, %60 : vector<32x128xf32>
    %c0_40 = arith.constant 0 : index
    %c0_41 = arith.constant 0 : index
    %62 = vector.load %arg14[%c0_40, %c0_41] : memref<32x128xf32, #tpu.memory_space<vmem>>, vector<32x128xf32>
    tpu.vector_store %arg14[%c0_40, %c0_41], %61 {strides = array<i32>} : memref<32x128xf32, #tpu.memory_space<vmem>>, vector<32x128xf32>,
    return
  }
  func.func @transform_0(%arg0: i32) -> (i32, i32) {
    %c0_i32 = arith.constant 0 : i32
    %c0_i32_0 = arith.constant 0 : i32
    return %arg0, %c0_i32 : i32, i32
  }
  func.func @transform_1(%arg0: i32) -> (i32, i32) {
    %c0_i32 = arith.constant 0 : i32
    %c0_i32_0 = arith.constant 0 : i32
    %c0_i32_1 = arith.constant 0 : i32
    return %c0_i32, %c0_i32_0 : i32, i32
  }
  func.func @transform_2(%arg0: i32) -> (i32, i32) {
    %c0_i32 = arith.constant 0 : i32
    %c0_i32_0 = arith.constant 0 : i32
    %c0_i32_1 = arith.constant 0 : i32
    return %c0_i32, %c0_i32_0 : i32, i32
  }
  func.func @transform_3(%arg0: i32) -> (i32, i32) {
    %c0_i32 = arith.constant 0 : i32
    %c0_i32_0 = arith.constant 0 : i32
    %c0_i32_1 = arith.constant 0 : i32
    return %c0_i32, %c0_i32_0 : i32, i32
  }
  func.func @transform_4(%arg0: i32) -> (i32, i32) {
    %c0_i32 = arith.constant 0 : i32
    %c0_i32_0 = arith.constant 0 : i32
    %c0_i32_1 = arith.constant 0 : i32
    return %c0_i32, %c0_i32_0 : i32, i32
  }
  func.func @transform_5(%arg0: i32) -> (i32, i32) {
    %c0_i32 = arith.constant 0 : i32
    %c0_i32_0 = arith.constant 0 : i32
    %c0_i32_1 = arith.constant 0 : i32
    return %c0_i32, %c0_i32_0 : i32, i32
  }
  func.func @transform_6(%arg0: i32) -> (i32, i32) {
    %c0_i32 = arith.constant 0 : i32
    %c0_i32_0 = arith.constant 0 : i32
    %c0_i32_1 = arith.constant 0 : i32
    return %c0_i32, %c0_i32_0 : i32, i32
  }
  func.func @transform_7(%arg0: i32) -> (i32, i32) {
    %c0_i32 = arith.constant 0 : i32
    %c0_i32_0 = arith.constant 0 : i32
    %c0_i32_1 = arith.constant 0 : i32
    return %c0_i32, %c0_i32_0 : i32, i32
  }
  func.func @transform_8(%arg0: i32) -> (i32, i32) {
    %c0_i32 = arith.constant 0 : i32
    %c0_i32_0 = arith.constant 0 : i32
    %c0_i32_1 = arith.constant 0 : i32
    return %c0_i32, %c0_i32_0 : i32, i32
  }
  func.func @transform_9(%arg0: i32) -> (i32, i32) {
    %c0_i32 = arith.constant 0 : i32
    %c0_i32_0 = arith.constant 0 : i32
    %c0_i32_1 = arith.constant 0 : i32
    return %c0_i32, %c0_i32_0 : i32, i32
  }
  func.func @transform_10(%arg0: i32) -> (i32, i32) {
    %c0_i32 = arith.constant 0 : i32
    %c0_i32_0 = arith.constant 0 : i32
    %c0_i32_1 = arith.constant 0 : i32
    return %c0_i32, %c0_i32_0 : i32, i32
  }
  func.func @transform_11(%arg0: i32) -> (i32, i32) {
    %c0_i32 = arith.constant 0 : i32
    %c0_i32_0 = arith.constant 0 : i32
    %c0_i32_1 = arith.constant 0 : i32
    return %c0_i32, %c0_i32_0 : i32, i32
  }
  func.func @transform_12(%arg0: i32) -> (i32, i32) {
    %c0_i32 = arith.constant 0 : i32
    %c0_i32_0 = arith.constant 0 : i32
    %c0_i32_1 = arith.constant 0 : i32
    return %c0_i32, %c0_i32_0 : i32, i32
  }
  func.func @transform_13(%arg0: i32) -> (i32, i32) {
    %c0_i32 = arith.constant 0 : i32
    %c0_i32_0 = arith.constant 0 : i32
    return %arg0, %c0_i32 : i32, i32
  }
}

</mosaic_0001>

<bundles_post_ra>
// kernel: ba_generator_mlp.1
= control target key start
LH: loop header
LB: loop body
LE: loop exit
PB: predicated region body
PF: predicated region fallthrough
CT: control target
= control target key end

     0   :  { %s3529_s0 = inlined_call_operand.hbm [shape: f32[64,128], index: 0, kind: input, shape index: {}]   ;;  %s3530_s1 = inlined_call_operand.hbm [shape: bf16[128,256], index: 1, kind: input, shape index: {}]   ;;  %s3531_s2 = inlined_call_operand.vmem [shape: f32[1,256], index: 2, kind: input, shape index: {}]   ;;  %s3532_s3 = inlined_call_operand.hbm [shape: bf16[256,256], index: 3, kind: input, shape index: {}]   ;;  %s3533_s4 = inlined_call_operand.vmem [shape: f32[1,256], index: 4, kind: input, shape index: {}]   ;;  %s3534_s5 = inlined_call_operand.hbm [shape: bf16[256,256], index: 5, kind: input, shape index: {}]   ;;  %s3535_s6 = inlined_call_operand.vmem [shape: f32[1,256], index: 6, kind: input, shape index: {}]   ;;  %s3536_s7 = inlined_call_operand.hbm [shape: bf16[256,256], index: 7, kind: input, shape index: {}]   ;;  %s3537_s8 = inlined_call_operand.vmem [shape: f32[1,256], index: 8, kind: input, shape index: {}]   ;;  %s3538_s9 = inlined_call_operand.hbm [shape: bf16[256,256], index: 9, kind: input, shape index: {}]   ;;  %s3539_s10 = inlined_call_operand.vmem [shape: f32[1,256], index: 10, kind: input, shape index: {}]   ;;  %s3540_s11 = inlined_call_operand.hbm [shape: bf16[256,128], index: 11, kind: input, shape index: {}]   ;;  %s3541_s12 = inlined_call_operand.vmem [shape: f32[1,128], index: 12, kind: input, shape index: {}]   ;;  %s3542_s13 = inlined_call_operand.hbm [shape: f32[64,128], index: 13, kind: output, shape index: {}]  }
   0x1   :  { %3548 = sst [smem:[#allocation20_spill]] %s3530_s1 }
   0x2   :  { %3549 = sst [smem:[#allocation21_spill]] %s3535_s6 }
   0x3   :  { %3550 = sst [smem:[#allocation22_spill]] %s3537_s8 }
   0x4   :  { %3551 = sst [smem:[#allocation23_spill]] %s3539_s10 }
   0x5   :  { %3552 = sst [smem:[#allocation24_spill]] %s3541_s12 }
   0x6   :  { %3553 = sst [smem:[#allocation25_spill]] %s3542_s13 }
   0x7   :  { %18 = vsyncpa [#allocation3], 0 }
   0x8   :  { %20 = vsyncpa [#allocation3 + $0x1], 0 }
   0x9   :  { %21 = vsyncpa [#allocation6], 0 }
   0xa   :  { %22 = vsyncpa [#allocation9], 0 }
   0xb   :  { %23 = vsyncpa [#allocation12], 0 }
   0xc   :  { %24 = vsyncpa [#allocation4], 0 }
   0xd   :  { %26 = vsyncpa [#allocation4 + $0x1], 0  ;;  %s3142_s25 = smov 0   ;;  %s3144_s26 = smov 0  }
   0xe   :  { %s3146_s27 = smov 0   ;;  %s3148_s28 = smov 0  }
   0xf LB: > { %s3057_s29 = smov [#allocation5]   ;;  %s3163_s14 = sadd.s32 4294967295, %s3055_s28   ;;  %s3055_s28 = sphi %s3148_s28, %s3583_s28   ;;  %s3051_s27 = sphi %s3146_s27, %s3582_s27   ;;  %s3047_s26 = sphi %s3144_s26, %s3581_s26   ;;  %s3043_s25 = sphi %s3142_s25, %s3580_s25  }
  0x10   : > { %s353_s30 = sshll.u32 %s3057_s29, 4  ;;  %p2217_p0 = scmp.ge.s32.totalorder %s3055_s28, 1  ;;  %s3168_s30 = int_to_ptr.vmem [resolvable:$true] %s353_s30 }
  0x11   : > { %p3544_p1 = scmp.eq.s32.totalorder %s3163_s14, 0  ;;  %p341_p2 = scmp.lt.s32.totalorder %s3055_s28, 3 }
  0x12   : > { %s3058_s16 = smov [#allocation8]   ;;  %s3059_s19 = smov [#allocation11]  }
  0x13   : > { %p3170_p3 = pnand %p2217_p0, %p341_p2  ;;  %s385_s17 = sshll.u32 %s3058_s16, 4  ;;  %s3183_s17 = int_to_ptr.vmem [resolvable:$true] %s385_s17 }
  0x14   : > { %s417_s20 = sshll.u32 %s3059_s19, 4  ;;  %s3556_s1 = sld [smem:[#allocation20_spill]]  ;;  %s3185_s20 = int_to_ptr.vmem [resolvable:$true] %s417_s20 }
  0x15   : > { %s3554_s15 = scalar_select %p3170_p3, 1, 0 }
  0x16   : > { %p2461_p5 = pneg %p3170_p3 }
  0x18   : > { %p3179_p6 = pnand %p2461_p5, %p3544_p1 }
  0x1a   : > { %s2779_s23 = scalar_lea.hbm %s3556_s1, 2048  ;;  %p3195_p8 = pneg %p3179_p6 }
  0x1b   : > { %p2780_p7 = scmp.ne.s32.totalorder %s3556_s1, %s2779_s23  ;;  %p2786_p11 = scmp.lt.u32.totalorder %s2779_s23, %s3556_s1 }
  0x1d   : > { %p2782_p9 = pnand %p3195_p8, %p2780_p7 }
  0x1f   : > { %p2783_p10 = pneg %p2782_p9 }
  0x21   : > { %p2788_p12 = pnand %p2786_p11, %p2783_p10 }
  0x23   : > { %2791 = shalt.err (!%p2788_p12)
}
  0x24   : > { %s2792_s21 = scalar_lea.vmem %s3168_s30, 2048  ;;  %p2800_p5 = scmp.lt.s32.totalorder %s3168_s30, %s3168_s30 }
  0x25   : > { %p2793_p13 = scmp.ne.s32.totalorder %s3168_s30, %s2792_s21  ;;  %p2801_p4 = scmp.lt.s32.totalorder %s2792_s21, %s2792_s21 }
  0x27   : > { %p2795_p0 = pnand %p2793_p13, %p3195_p8  ;;  %p2802_p7 = por %p2801_p4, %p2800_p5 }
  0x29   : > { %p2796_p2 = pneg %p2795_p0 }
  0x2b   : > { %p2803_p9 = pnand %p2802_p7, %p2796_p2 }
  0x2d   : > { %2806 = shalt.err (!%p2803_p9)
}
  0x2e   : > { %s3546_s22 = smov 128   ;;  %s3061_s13 = smov 8  }
  0x2f   : > { %2464 = dma.hbm_to_vmem [thread:$0]  (!%p3179_p6), %s3556_s1, 2048, %s3168_s30, [#allocation6], %s3546_s22, %s3546_s22, %s3061_s13  }
  0x30   : > { %s2807_s21 = scalar_lea.hbm %s3534_s5, 4096 }
  0x31   : > { %p2808_p4 = scmp.ne.s32.totalorder %s3534_s5, %s2807_s21  ;;  %p2814_p12 = scmp.lt.u32.totalorder %s2807_s21, %s3534_s5 }
  0x33   : > { %p2810_p10 = pnand %p2808_p4, %p3195_p8 }
  0x35   : > { %p2811_p11 = pneg %p2810_p10 }
  0x37   : > { %p2816_p13 = pnand %p2814_p12, %p2811_p11 }
  0x39   : > { %2819 = shalt.err (!%p2816_p13)
}
  0x3a   : > { %s2820_s30 = scalar_lea.vmem %s3183_s17, 4096  ;;  %p2828_p7 = scmp.lt.s32.totalorder %s3183_s17, %s3183_s17 }
  0x3b   : > { %p2821_p0 = scmp.ne.s32.totalorder %s3183_s17, %s2820_s30  ;;  %p2829_p9 = scmp.lt.s32.totalorder %s2820_s30, %s2820_s30 }
  0x3d   : > { %p2823_p2 = pnand %p2821_p0, %p3195_p8  ;;  %p2830_p4 = por %p2829_p9, %p2828_p7 }
  0x3f   : > { %p2824_p5 = pneg %p2823_p2 }
  0x41   : > { %p2831_p10 = pnand %p2830_p4, %p2824_p5 }
  0x43   : > { %2834 = shalt.err (!%p2831_p10)
}
  0x44   : > { %2470 = dma.hbm_to_vmem [thread:$0]  (!%p3179_p6), %s3534_s5, 4096, %s3183_s17, [#allocation9], %s3546_s22, %s3546_s22, %s3061_s13  }
  0x45   : > { %s2835_s23 = scalar_lea.hbm %s3538_s9, 4096 }
  0x46   : > { %p2836_p11 = scmp.ne.s32.totalorder %s3538_s9, %s2835_s23  ;;  %p2842_p0 = scmp.lt.u32.totalorder %s2835_s23, %s3538_s9 }
  0x48   : > { %p2838_p12 = pnand %p2836_p11, %p3195_p8 }
  0x4a   : > { %p2839_p13 = pneg %p2838_p12 }
  0x4c   : > { %p2844_p2 = pnand %p2842_p0, %p2839_p13 }
  0x4e   : > { %2847 = shalt.err (!%p2844_p2)
}
  0x4f   : > { %s2848_s17 = scalar_lea.vmem %s3185_s20, 4096  ;;  %p2856_p4 = scmp.lt.s32.totalorder %s3185_s20, %s3185_s20 }
  0x50   : > { %p2849_p5 = scmp.ne.s32.totalorder %s3185_s20, %s2848_s17  ;;  %p2857_p10 = scmp.lt.s32.totalorder %s2848_s17, %s2848_s17 }
  0x52   : > { %p2851_p7 = pnand %p2849_p5, %p3195_p8  ;;  %p2858_p11 = por %p2857_p10, %p2856_p4 }
  0x54   : > { %p2852_p9 = pneg %p2851_p7 }
  0x56   : > { %p2859_p12 = pnand %p2858_p11, %p2852_p9 }
  0x58   : > { %2862 = shalt.err (!%p2859_p12)
}
  0x59   : > { %2476 = dma.hbm_to_vmem [thread:$0]  (!%p3179_p6), %s3538_s9, 4096, %s3185_s20, [#allocation12], %s3546_s22, %s3546_s22, %s3061_s13  }
  0x5a   : > { %s3062_s8 = smov [#allocation7]   ;;  %s3063_s12 = smov [#allocation10]  }
  0x5b   : > { %s369_s10 = sshll.u32 %s3062_s8, 4  ;;  %s401_s23 = sshll.u32 %s3063_s12, 4  ;;  %s370_s10 = int_to_ptr.vmem [resolvable:$true] %s369_s10  ;;  %s402_s23 = int_to_ptr.vmem [resolvable:$true] %s401_s23 }
  0x5c   : > { %s2863_s19 = scalar_lea.hbm %s3532_s3, 4096 }
  0x5d   : > { %p2864_p13 = scmp.ne.s32.totalorder %s3532_s3, %s2863_s19  ;;  %p2870_p5 = scmp.lt.u32.totalorder %s2863_s19, %s3532_s3 }
  0x5f   : > { %p2866_p0 = pnand %p2864_p13, %p3195_p8 }
  0x61   : > { %p2867_p2 = pneg %p2866_p0 }
  0x63   : > { %p2872_p7 = pnand %p2870_p5, %p2867_p2 }
  0x65   : > { %2875 = shalt.err (!%p2872_p7)
}
  0x66   : > { %s2876_s20 = scalar_lea.vmem %s370_s10, 4096  ;;  %p2884_p11 = scmp.lt.s32.totalorder %s370_s10, %s370_s10 }
  0x67   : > { %p2877_p9 = scmp.ne.s32.totalorder %s370_s10, %s2876_s20  ;;  %p2885_p12 = scmp.lt.s32.totalorder %s2876_s20, %s2876_s20 }
  0x69   : > { %p2879_p4 = pnand %p2877_p9, %p3195_p8  ;;  %p2886_p1 = por %p2885_p12, %p2884_p11 }
  0x6b   : > { %p2880_p10 = pneg %p2879_p4 }
  0x6d   : > { %p2887_p3 = pnand %p2886_p1, %p2880_p10 }
  0x6f   : > { %2890 = shalt.err (!%p2887_p3)
}
  0x70   : > { %2467 = dma.hbm_to_vmem [thread:$0]  (!%p3179_p6), %s3532_s3, 4096, %s370_s10, [#allocation6], %s3546_s22, %s3546_s22, %s3061_s13  }
  0x71   : > { %s2891_s24 = scalar_lea.hbm %s3536_s7, 4096 }
  0x72   : > { %p2892_p1 = scmp.ne.s32.totalorder %s3536_s7, %s2891_s24  ;;  %p2898_p0 = scmp.lt.u32.totalorder %s2891_s24, %s3536_s7 }
  0x74   : > { %p2894_p3 = pnand %p2892_p1, %p3195_p8 }
  0x76   : > { %p2895_p13 = pneg %p2894_p3 }
  0x78   : > { %p2900_p2 = pnand %p2898_p0, %p2895_p13 }
  0x7a   : > { %2903 = shalt.err (!%p2900_p2)
}
  0x7b   : > { %s2904_s30 = scalar_lea.vmem %s402_s23, 4096  ;;  %p2912_p4 = scmp.lt.s32.totalorder %s402_s23, %s402_s23 }
  0x7c   : > { %p2905_p5 = scmp.ne.s32.totalorder %s402_s23, %s2904_s30  ;;  %p2913_p10 = scmp.lt.s32.totalorder %s2904_s30, %s2904_s30 }
  0x7e   : > { %p2907_p7 = pnand %p2905_p5, %p3195_p8  ;;  %p2914_p11 = por %p2913_p10, %p2912_p4 }
  0x80   : > { %p2908_p9 = pneg %p2907_p7 }
  0x82   : > { %p2915_p12 = pnand %p2914_p11, %p2908_p9 }
  0x84   : > { %2918 = shalt.err (!%p2915_p12)
}
  0x85   : > { %2473 = dma.hbm_to_vmem [thread:$0]  (!%p3179_p6), %s3536_s7, 4096, %s402_s23, [#allocation9], %s3546_s22, %s3546_s22, %s3061_s13  }
  0x86   : > { %s3064_s1 = smov [#allocation13]   ;;  %s2919_s24 = scalar_lea.hbm %s3540_s11, 2048 }
  0x87   : > { %s433_s6 = sshll.u32 %s3064_s1, 4  ;;  %p2920_p1 = scmp.ne.s32.totalorder %s3540_s11, %s2919_s24  ;;  %s434_s6 = int_to_ptr.vmem [resolvable:$true] %s433_s6 }
  0x88   : > { %p2926_p0 = scmp.lt.u32.totalorder %s2919_s24, %s3540_s11 }
  0x89   : > { %p2922_p3 = pnand %p2920_p1, %p3195_p8 }
  0x8b   : > { %p2923_p13 = pneg %p2922_p3 }
  0x8d   : > { %p2928_p2 = pnand %p2926_p0, %p2923_p13 }
  0x8f   : > { %2931 = shalt.err (!%p2928_p2)
}
  0x90   : > { %s2932_s23 = scalar_lea.vmem %s434_s6, 2048  ;;  %p2940_p4 = scmp.lt.s32.totalorder %s434_s6, %s434_s6 }
  0x91   : > { %p2933_p5 = scmp.ne.s32.totalorder %s434_s6, %s2932_s23  ;;  %p2941_p10 = scmp.lt.s32.totalorder %s2932_s23, %s2932_s23 }
  0x93   : > { %p2935_p7 = pnand %p2933_p5, %p3195_p8  ;;  %p2942_p11 = por %p2941_p10, %p2940_p4 }
  0x95   : > { %p2936_p9 = pneg %p2935_p7 }
  0x97   : > { %p2943_p12 = pnand %p2942_p11, %p2936_p9 }
  0x99   : > { %2946 = shalt.err (!%p2943_p12)
}
  0x9a   : > { %s3065_s30 = smov 64   ;;  %s3066_s16 = smov 4  }
  0x9b   : > { %2479 = dma.hbm_to_vmem [thread:$0]  (!%p3179_p6), %s3540_s11, 2048, %s434_s6, [#allocation12], %s3065_s30, %s3065_s30, %s3066_s16  }
  0x9c   : > { %s2216_s1 = sadd.s32 4294967294, %s3055_s28   ;;  %s3333_s8 = sadd.s32 1, %s3055_s28  }
  0x9d   : > { %s36_s12 = ssub.s32 %s3055_s28, %s3333_s8  ;;  %s39_s24 = sadd.s32 1, %s3051_s27 }
  0x9e   : > { %p37_p8 = scmp.eq.s32.totalorder %s36_s12, 0  ;;  %p46_p1 = scmp.ne.s32.totalorder %s3051_s27, %s3047_s26 }
  0x9f   : > { %p47_p3 = scmp.eq.s32.totalorder %s3055_s28, 0  ;;  %p52_p13 = scmp.ne.s32.totalorder %s3047_s26, %s3043_s25 }
  0xa0   : > { %s3344_s29 = scalar_select %p37_p8, %s3051_s27, %s39_s24  }
  0xa1   : > { %p3346_p0 = por %p47_p3, %p46_p1  ;;  %p3559_p2 = scmp.eq.s32.totalorder %s3163_s14, 0 }
  0xa2   : > { %p328_p5 = scmp.eq.s32.totalorder %s3163_s14, 1  ;;  %p334_p7 = scmp.eq.s32.totalorder %s2216_s1, 1 }
  0xa3   : > { %p3352_p6 = por %p3559_p2, %p52_p13  ;;  %p2494_p9 = scmp.lt.s32.totalorder %s3055_s28, 2 }
  0xa4   : > { %s450_s19 = sand.u32 1, %s3051_s27   ;;  %p3359_p4 = por %p328_p5, %p46_p1 }
  0xa5   : > { %p3363_p10 = por %p334_p7, %p52_p13  ;;  %s2225_s23 = sshll.u32 %s450_s19, 5 }
  0xa6   : > { %s3561_s21 = scalar_select %p3359_p4, 1, 0 }
  0xa7   : > { %s3562_s17 = scalar_select %p3363_p10, 1, 0 }
  0xa8   : > { %s2403_s30 = sshll.u32 %s3055_s28, 9  ;;  %s454_s1 = scalar_lea.vmem [#allocation2], %s2225_s23 }
  0xa9   : > { %s3371_s20 = scalar_lea.hbm %s3529_s0, %s2403_s30  ;;  %s461_s12 = sshll.u32 %s454_s1, 4  ;;  %s3373_s12 = int_to_ptr.vmem [resolvable:$true] %s461_s12 }
  0xaa   : > { %p3377_p11 = pnand %p2494_p9, %p3346_p0  ;;  %s3381_s22 = scalar_lea.sflag [#allocation3], %s450_s19 }
  0xab   : > { %s2947_s16 = scalar_lea.hbm %s3371_s20, 512  ;;  %s2952_s18 = scalar_lea.hbm %s3529_s0, 1024 }
  0xac   : > { %p2948_p12 = scmp.ne.s32.totalorder %s3371_s20, %s2947_s16  ;;  %p2949_p8 = pneg %p3377_p11 }
  0xad   : > { %p2953_p13 = scmp.lt.u32.totalorder %s3371_s20, %s3529_s0  ;;  %p2954_p0 = scmp.lt.u32.totalorder %s2952_s18, %s2947_s16 }
  0xae   : > { %p2950_p1 = pnand %p2949_p8, %p2948_p12  ;;  %p2956_p5 = scmp.lt.u32.totalorder %s2947_s16, %s3371_s20 }
  0xaf   : > { %p2955_p2 = por %p2954_p0, %p2953_p13 }
  0xb0   : > { %p2951_p3 = pneg %p2950_p1 }
  0xb1   : > { %p2957_p7 = por %p2956_p5, %p2955_p2 }
  0xb3   : > { %p2958_p9 = pnand %p2957_p7, %p2951_p3 }
  0xb5   : > { %2961 = shalt.err (!%p2958_p9)
}
  0xb6   : > { %s2962_s19 = scalar_lea.vmem %s3373_s12, 512  ;;  %s3067_s23 = smov [#allocation2]  }
  0xb7   : > { %p2963_p12 = scmp.ne.s32.totalorder %s3373_s12, %s2962_s19  ;;  %s2967_s30 = sshll.u32 %s3067_s23, 4  ;;  %s2968_s30 = int_to_ptr.vmem [resolvable:$false] %s2967_s30 }
  0xb8   : > { %s2969_s10 = scalar_lea.vmem %s2968_s30, 1024  ;;  %p2970_p4 = scmp.lt.s32.totalorder %s3373_s12, %s2968_s30 }
  0xb9   : > { %p2965_p1 = pnand %p2963_p12, %p2949_p8  ;;  %p2971_p13 = scmp.lt.s32.totalorder %s2969_s10, %s2962_s19 }
  0xbb   : > { %p2966_p10 = pneg %p2965_p1  ;;  %p2972_p0 = por %p2971_p13, %p2970_p4 }
  0xbd   : > { %p2973_p2 = pnand %p2972_p0, %p2966_p10 }
  0xbf   : > { %2976 = shalt.err (!%p2973_p2)
}
  0xc0   : > { %s3564_s16 = smov 128   ;;  %p3565_p8 = scmp.ne.s32.totalorder %s3554_s15, 0 }
  0xc1   : > { %2483 = dma.hbm_to_vmem [thread:$0]  (!%p3377_p11), %s3371_s20, 512, %s3373_s12, %s3381_s22, %s3564_s16, %s3564_s16, %s3061_s13  }
  0xc2   : > { %473 = sbr.rel (%p3565_p8) target bundleno = 1602 (0x642), region = 72  ;;  %s3415_s18 = sand.u32 (!%p3565_p8), 1, %s3047_s26  }
  0xc3   : > { %s2229_s1 = sshll.u32 (!%p3565_p8), %s3415_s18, 5  ;;  %s476_s19 = scalar_lea.sflag (!%p3565_p8), [#allocation3], %s3415_s18 }
  0xc4   : > { %s3421_s24 = scalar_lea.vmem (!%p3565_p8), [#allocation2], %s2229_s1 }
  0xc9   : > { %3022 = dma.done.wait (%p3352_p6), %s476_s19, 512  }
  0xca   : > { %3024 = vsyncadd (%p3352_p6), %s476_s19, 4294966784  ;;  %p3566_p4 = scmp.eq.s32.totalorder %s3163_s14, 0 }
  0xcc   : > { %3026 = dma.done.wait (%p3566_p4), [#allocation6], 6144   ;;  %p3567_p10 = pmov %p3566_p4 }
  0xcd   : > { %p3568_p11 = pmov %p3566_p4 }
  0xce   : > { %3028 = vsyncadd (%p3567_p10), [#allocation6], 4294961152 }
  0xcf   : > { %3030 = dma.done.wait (%p3568_p11), [#allocation9], 8192   ;;  %p3569_p3 = pmov %p3566_p4 }
  0xd1   : > { %3032 = vsyncadd (%p3569_p3), [#allocation9], 4294959104  ;;  %p3570_p5 = pmov %p3569_p3 }
  0xd2   : > { %p3571_p7 = pmov %p3569_p3 }
  0xd3   : > { %3034 = dma.done.wait (%p3570_p5), [#allocation12], 6144  }
  0xd4   : > { %3036 = vsyncadd (%p3571_p7), [#allocation12], 4294961152  ;;  %v3068_v0 = vmov 0   ;;  %v2547_v1 = vld [vmem:[#allocation5 + $0x4] ss:$8 sps:$4 sm:$0xff]   ;;  %v551_v33 = vld [vmem:[%s3421_s24 + $0x10] sm:$0xff] }
  0xd5   : > { %695 = vmatprep.mubr.bf16.mxu0 %v3068_v0  ;;  %v2549_v2 = vld [vmem:[#allocation5] ss:$8 sps:$4 sm:$0xff]   ;;  %663 = vmatprep.subr.bf16.mxu0 %v2547_v1  ;;  %v2550_v3 = vld [vmem:[#allocation5 + $0x14] ss:$8 sps:$4 sm:$0xff]   ;;  %v2552_v4 = vld [vmem:[#allocation5 + $0x10] ss:$8 sps:$4 sm:$0xff]  }
  0xd6   : > { %664 = vmatpush1.bf16.msra.mxu0 %v2549_v2  ;;  %v2553_v5 = vld [vmem:[#allocation5 + $0x24] ss:$8 sps:$4 sm:$0xff]   ;;  %v2555_v6 = vld [vmem:[#allocation5 + $0x20] ss:$8 sps:$4 sm:$0xff]   ;;  %v2556_v7 = vld [vmem:[#allocation5 + $0x34] ss:$8 sps:$4 sm:$0xff]  }
  0xd7   : > { %665 = vmatprep.subr.bf16.mxu0 %v2550_v3  ;;  %v2558_v8 = vld [vmem:[#allocation5 + $0x30] ss:$8 sps:$4 sm:$0xff]   ;;  %v2559_v9 = vld [vmem:[#allocation5 + $0x44] ss:$8 sps:$4 sm:$0xff]   ;;  %v2573_v11 = vld [vmem:[#allocation7] ss:$8 sps:$4 sm:$0xff]  }
  0xd8   : > { %v2571_v10 = vld [vmem:[#allocation7 + $0x4] ss:$8 sps:$4 sm:$0xff]   ;;  %v2561_v12 = vld [vmem:[#allocation5 + $0x40] ss:$8 sps:$4 sm:$0xff]   ;;  %v2574_v13 = vld [vmem:[#allocation7 + $0x14] ss:$8 sps:$4 sm:$0xff]  }
  0xd9   : > { %948 = vmatprep.subr.bf16.mxu1 %v2571_v10  ;;  %v2562_v14 = vld [vmem:[#allocation5 + $0x54] ss:$8 sps:$4 sm:$0xff]   ;;  %v2576_v15 = vld [vmem:[#allocation7 + $0x10] ss:$8 sps:$4 sm:$0xff]   ;;  %v2577_v16 = vld [vmem:[#allocation7 + $0x24] ss:$8 sps:$4 sm:$0xff]  }
  0xda   : > { %666 = vmatpush1.bf16.msra.mxu0 %v2552_v4  ;;  %949 = vmatpush1.bf16.msra.mxu1 %v2573_v11  ;;  %v2564_v17 = vld [vmem:[#allocation5 + $0x50] ss:$8 sps:$4 sm:$0xff]   ;;  %v2565_v18 = vld [vmem:[#allocation5 + $0x64] ss:$8 sps:$4 sm:$0xff]   ;;  %v2579_v19 = vld [vmem:[#allocation7 + $0x20] ss:$8 sps:$4 sm:$0xff]  }
  0xdb   : > { %667 = vmatprep.subr.bf16.mxu0 %v2553_v5  ;;  %950 = vmatprep.subr.bf16.mxu1 %v2574_v13  ;;  %v2580_v20 = vld [vmem:[#allocation7 + $0x34] ss:$8 sps:$4 sm:$0xff]   ;;  %v2567_v21 = vld [vmem:[#allocation5 + $0x60] ss:$8 sps:$4 sm:$0xff]   ;;  %v2582_v23 = vld [vmem:[#allocation7 + $0x30] ss:$8 sps:$4 sm:$0xff]  }
  0xdc   : > { %v2568_v22 = vld [vmem:[#allocation5 + $0x74] ss:$8 sps:$4 sm:$0xff]   ;;  %v2583_v24 = vld [vmem:[#allocation7 + $0x44] ss:$8 sps:$4 sm:$0xff]   ;;  %v2570_v25 = vld [vmem:[#allocation5 + $0x70] ss:$8 sps:$4 sm:$0xff]  }
  0xdd   : > { %v549_v26 = vld [vmem:[%s3421_s24] sm:$0xff]  ;;  %v550_v27 = vld [vmem:[%s3421_s24 + $0x8] sm:$0xff]  ;;  %v2586_v29 = vld [vmem:[#allocation7 + $0x54] ss:$8 sps:$4 sm:$0xff]   ;;  %s3572_s23 = sld [smem:[#allocation21_spill]]  ;;  %s3573_s16 = sld [smem:[#allocation22_spill]] }
  0xde   : > { %668 = vmatpush1.bf16.msra.mxu0 %v2555_v6  ;;  %951 = vmatpush1.bf16.msra.mxu1 %v2576_v15  ;;  %v2585_v28 = vld [vmem:[#allocation7 + $0x40] ss:$8 sps:$4 sm:$0xff]   ;;  %v2588_v30 = vld [vmem:[#allocation7 + $0x50] ss:$8 sps:$4 sm:$0xff]   ;;  %v553_v31 = vpack.c.bf16 %v550_v27, %v549_v26  ;;  %v2589_v32 = vld [vmem:[#allocation7 + $0x64] ss:$8 sps:$4 sm:$0xff]  }
  0xdf   : > { %669 = vmatprep.subr.bf16.mxu0 %v2556_v7  ;;  %952 = vmatprep.subr.bf16.mxu1 %v2577_v16  ;;  %v552_v34 = vld [vmem:[%s3421_s24 + $0x18] sm:$0xff]  ;;  %v2591_v35 = vld [vmem:[#allocation7 + $0x60] ss:$8 sps:$4 sm:$0xff]   ;;  %v2595_v39 = vld [vmem:[#allocation7 + $0x84] ss:$8 sps:$4 sm:$0xff]   ;;  %s3574_s15 = sld [smem:[#allocation23_spill]] }
  0xe0   : > { %v2592_v36 = vld [vmem:[#allocation7 + $0x74] ss:$8 sps:$4 sm:$0xff]   ;;  %v2594_v37 = vld [vmem:[#allocation7 + $0x70] ss:$8 sps:$4 sm:$0xff]   ;;  %v554_v38 = vpack.c.bf16 %v552_v34, %v551_v33  ;;  %v2597_v40 = vld [vmem:[#allocation7 + $0x80] ss:$8 sps:$4 sm:$0xff]  }
  0xe1   : > { %v2598_v41 = vld [vmem:[#allocation7 + $0x94] ss:$8 sps:$4 sm:$0xff]   ;;  %v2600_v42 = vld [vmem:[#allocation7 + $0x90] ss:$8 sps:$4 sm:$0xff]   ;;  %v2601_v43 = vld [vmem:[#allocation7 + $0xa4] ss:$8 sps:$4 sm:$0xff]  }
  0xe2   : > { %670 = vmatpush1.bf16.msra.mxu0 %v2558_v8  ;;  %953 = vmatpush1.bf16.msra.mxu1 %v2579_v19  ;;  %v2603_v44 = vld [vmem:[#allocation7 + $0xa0] ss:$8 sps:$4 sm:$0xff]   ;;  %v2604_v45 = vld [vmem:[#allocation7 + $0xb4] ss:$8 sps:$4 sm:$0xff]   ;;  %v2606_v46 = vld [vmem:[#allocation7 + $0xb0] ss:$8 sps:$4 sm:$0xff]  }
  0xe3   : > { %671 = vmatprep.subr.bf16.mxu0 %v2559_v9  ;;  %954 = vmatprep.subr.bf16.mxu1 %v2580_v20  ;;  %v2607_v47 = vld [vmem:[#allocation7 + $0xc4] ss:$8 sps:$4 sm:$0xff]   ;;  %v2609_v48 = vld [vmem:[#allocation7 + $0xc0] ss:$8 sps:$4 sm:$0xff]   ;;  %v2610_v49 = vld [vmem:[#allocation7 + $0xd4] ss:$8 sps:$4 sm:$0xff]  }
  0xe4   : > { %v2612_v50 = vld [vmem:[#allocation7 + $0xd0] ss:$8 sps:$4 sm:$0xff]   ;;  %v2613_v51 = vld [vmem:[#allocation7 + $0xe4] ss:$8 sps:$4 sm:$0xff]   ;;  %v2615_v52 = vld [vmem:[#allocation7 + $0xe0] ss:$8 sps:$4 sm:$0xff]  }
  0xe5   : > { %v2616_v53 = vld [vmem:[#allocation7 + $0xf4] ss:$8 sps:$4 sm:$0xff]   ;;  %v2618_v54 = vld [vmem:[#allocation7 + $0xf0] ss:$8 sps:$4 sm:$0xff]   ;;  %v2619_v55 = vld [vmem:[#allocation8] ss:$8 sps:$4 sm:$0xff]  }
  0xe6   : > { %672 = vmatpush1.bf16.msra.mxu0 %v2561_v12  ;;  %955 = vmatpush1.bf16.msra.mxu1 %v2582_v23  ;;  %v2621_v56 = vld [vmem:[#allocation8 + $0x4] ss:$8 sps:$4 sm:$0xff]   ;;  %v2624_v57 = vld [vmem:[#allocation8 + $0x14] ss:$8 sps:$4 sm:$0xff]   ;;  %v2622_v58 = vld [vmem:[#allocation8 + $0x10] ss:$8 sps:$4 sm:$0xff]  }
  0xe7   : > { %673 = vmatprep.subr.bf16.mxu0 %v2562_v14  ;;  %956 = vmatprep.subr.bf16.mxu1 %v2583_v24  ;;  %v2627_v59 = vld [vmem:[#allocation8 + $0x24] ss:$8 sps:$4 sm:$0xff]   ;;  %v2625_v60 = vld [vmem:[#allocation8 + $0x20] ss:$8 sps:$4 sm:$0xff]   ;;  %v2630_v61 = vld [vmem:[#allocation8 + $0x34] ss:$8 sps:$4 sm:$0xff]  }
  0xe8   : > { %v2628_v62 = vld [vmem:[#allocation8 + $0x30] ss:$8 sps:$4 sm:$0xff]   ;;  %v2633_v63 = vld [vmem:[#allocation8 + $0x44] ss:$8 sps:$4 sm:$0xff]   ;;  %v2636_v1 = vld [vmem:[#allocation8 + $0x54] ss:$8 sps:$4 sm:$0xff]  }
  0xe9   : > { %v2634_v2 = vld [vmem:[#allocation8 + $0x50] ss:$8 sps:$4 sm:$0xff]   ;;  %v2639_v3 = vld [vmem:[#allocation8 + $0x64] ss:$8 sps:$4 sm:$0xff]   ;;  %v2637_v4 = vld [vmem:[#allocation8 + $0x60] ss:$8 sps:$4 sm:$0xff]  }
  0xea   : > { %674 = vmatpush1.bf16.msra.mxu0 %v2564_v17  ;;  %957 = vmatpush1.bf16.msra.mxu1 %v2585_v28  ;;  %v2642_v5 = vld [vmem:[#allocation8 + $0x74] ss:$8 sps:$4 sm:$0xff]   ;;  %v2640_v6 = vld [vmem:[#allocation8 + $0x70] ss:$8 sps:$4 sm:$0xff]   ;;  %v2645_v7 = vld [vmem:[#allocation8 + $0x84] ss:$8 sps:$4 sm:$0xff]   ;;  %v573_v17 = vlaneseq }
  0xeb   : > { %675 = vmatprep.subr.bf16.mxu0 %v2565_v18  ;;  %958 = vmatprep.subr.bf16.mxu1 %v2586_v29  ;;  %v2643_v8 = vld [vmem:[#allocation8 + $0x80] ss:$8 sps:$4 sm:$0xff]   ;;  %v2648_v9 = vld [vmem:[#allocation8 + $0x94] ss:$8 sps:$4 sm:$0xff]   ;;  %v2646_v10 = vld [vmem:[#allocation8 + $0x90] ss:$8 sps:$4 sm:$0xff]  }
  0xec   : > { %v2651_v11 = vld [vmem:[#allocation8 + $0xa4] ss:$8 sps:$4 sm:$0xff]   ;;  %v2649_v12 = vld [vmem:[#allocation8 + $0xa0] ss:$8 sps:$4 sm:$0xff]   ;;  %v2654_v13 = vld [vmem:[#allocation8 + $0xb4] ss:$8 sps:$4 sm:$0xff]  }
  0xed   : > { %v2652_v14 = vld [vmem:[#allocation8 + $0xb0] ss:$8 sps:$4 sm:$0xff]   ;;  %v2657_v15 = vld [vmem:[#allocation8 + $0xc4] ss:$8 sps:$4 sm:$0xff]   ;;  %v2655_v16 = vld [vmem:[#allocation8 + $0xc0] ss:$8 sps:$4 sm:$0xff]  }
  0xee   : > { %676 = vmatpush1.bf16.msra.mxu0 %v2567_v21  ;;  %959 = vmatpush1.bf16.msra.mxu1 %v2588_v30  ;;  %v574_v18 = vshrl.u32 %v573_v17, 7  ;;  %v571_v20 = vld [vmem:[%s3531_s2] sm:$0x3]  ;;  %v2688_v17 = vld [vmem:[#allocation10 + $0x70] ss:$8 sps:$4 sm:$0xff]   ;;  %s3575_s6 = sld [smem:[#allocation24_spill]] }
  0xef   : > { %677 = vmatprep.subr.bf16.mxu0 %v2568_v22  ;;  %960 = vmatprep.subr.bf16.mxu1 %v2589_v32  ;;  %s545_s20 = scalar_lea.vmem [#allocation14], %s2229_s1  ;;  %s3576_s10 = sld [smem:[#allocation25_spill]] }
  0xf0   : > { %v3445_v19 = vsub.s32 0, %v574_v18  ;;  %v3450_v21 = vsub.s32 1, %v574_v18  ;;  %v2693_v18 = vld [vmem:[#allocation10 + $0x84] ss:$8 sps:$4 sm:$0xff]   ;;  %s2086_s12 = sshll.u32 %s545_s20, 4  ;;  %s2073_s19 = scalar_lea.sflag [#allocation4], %s3415_s18  ;;  %s3480_s12 = int_to_ptr.vmem [resolvable:$true] %s2086_s12 }
  0xf1   : > { %s2977_s24 = scalar_lea.vmem %s3480_s12, 512  ;;  %p3577_p9 = scmp.ne.s32.totalorder %s3561_s21, 0 }
  0xf2   : > { %678 = vmatpush1.bf16.msra.mxu0 %v2570_v25  ;;  %961 = vmatpush1.bf16.msra.mxu1 %v2591_v35  ;;  %v576_v22 = vrot.slane %v571_v20, %v3445_v19  ;;  %v580_v23 = vrot.slane %v571_v20, %v3450_v21  ;;  %v2691_v20 = vld [vmem:[#allocation10 + $0x80] ss:$8 sps:$4 sm:$0xff]   ;;  %p2978_p6 = scmp.ne.s32.totalorder %s3480_s12, %s2977_s24 }
  0xf3   : > { %962 = vmatprep.subr.bf16.mxu1 %v2592_v36  ;;  %1233 = vmatprep.subr.bf16.mxu0 %v2621_v56 }
  0xf4   : > { %p2979_p12 = pnand %p2978_p6, %p3577_p9 }
  0xf5   : > { %696 = vmatmul.mubr.bf16.vlgmr.msra.gmra.mrb[0].mxu0 %v553_v31 }
  0xf6   : > { %705 = vmatprep.mubr.bf16.mxu0 %v3068_v0  ;;  %963 = vmatpush1.bf16.msra.mxu1 %v2594_v37  ;;  %v2631_v0 = vld [vmem:[#allocation8 + $0x40] ss:$8 sps:$4 sm:$0xff]   ;;  %p2980_p1 = pneg %p2979_p12 }
  0xf7   : > { %964 = vmatprep.subr.bf16.mxu1 %v2595_v39  ;;  %1234 = vmatpush1.bf16.msra.mxu0 %v2619_v55 }
  0xf8   : > { %1235 = vmatprep.subr.bf16.mxu0 %v2624_v57 }
  0xfa   : > { %965 = vmatpush1.bf16.msra.mxu1 %v2597_v40 }
  0xfb   : > { %966 = vmatprep.subr.bf16.mxu1 %v2598_v41  ;;  %1236 = vmatpush1.bf16.msra.mxu0 %v2622_v58 }
  0xfc   : > { %1237 = vmatprep.subr.bf16.mxu0 %v2627_v59 }
  0xfd   : > { %706 = vmatmul.mubr.bf16.gmra.mrb[4].mxu0 %v554_v38 }
  0xfe   : > { %967 = vmatpush1.bf16.msra.mxu1 %v2600_v42 }
  0xff   : > { %968 = vmatprep.subr.bf16.mxu1 %v2601_v43  ;;  %1238 = vmatpush1.bf16.msra.mxu0 %v2625_v60  ;;  %v2660_v60 = vld [vmem:[#allocation8 + $0xd4] ss:$8 sps:$4 sm:$0xff]  }
 0x100   : > { %1239 = vmatprep.subr.bf16.mxu0 %v2630_v61  ;;  %v2658_v61 = vld [vmem:[#allocation8 + $0xd0] ss:$8 sps:$4 sm:$0xff]  }
 0x102   : > { %969 = vmatpush1.bf16.msra.mxu1 %v2603_v44 }
 0x103   : > { %970 = vmatprep.subr.bf16.mxu1 %v2604_v45  ;;  %1240 = vmatpush1.bf16.msra.mxu0 %v2628_v62  ;;  %v2663_v62 = vld [vmem:[#allocation8 + $0xe4] ss:$8 sps:$4 sm:$0xff]  }
 0x104   : > { %1241 = vmatprep.subr.bf16.mxu0 %v2633_v63  ;;  %v2661_v63 = vld [vmem:[#allocation8 + $0xe0] ss:$8 sps:$4 sm:$0xff]  }
 0x106   : > { %971 = vmatpush1.bf16.msra.mxu1 %v2606_v46 }
 0x107   : > { %972 = vmatprep.subr.bf16.mxu1 %v2607_v47  ;;  %1242 = vmatpush1.bf16.msra.mxu0 %v2631_v0  ;;  %v2666_v0 = vld [vmem:[#allocation8 + $0xf4] ss:$8 sps:$4 sm:$0xff]  }
 0x108   : > { %1243 = vmatprep.subr.bf16.mxu0 %v2636_v1  ;;  %v2664_v1 = vld [vmem:[#allocation8 + $0xf0] ss:$8 sps:$4 sm:$0xff]  }
 0x10a   : > { %973 = vmatpush1.bf16.msra.mxu1 %v2609_v48 }
 0x10b   : > { %974 = vmatprep.subr.bf16.mxu1 %v2610_v49  ;;  %1244 = vmatpush1.bf16.msra.mxu0 %v2634_v2  ;;  %v2667_v2 = vld [vmem:[#allocation10] ss:$8 sps:$4 sm:$0xff]  }
 0x10c   : > { %1245 = vmatprep.subr.bf16.mxu0 %v2639_v3  ;;  %v2669_v3 = vld [vmem:[#allocation10 + $0x4] ss:$8 sps:$4 sm:$0xff]  }
 0x10e   : > { %975 = vmatpush1.bf16.msra.mxu1 %v2612_v50 }
 0x10f   : > { %976 = vmatprep.subr.bf16.mxu1 %v2613_v51  ;;  %1246 = vmatpush1.bf16.msra.mxu0 %v2637_v4  ;;  %v2672_v4 = vld [vmem:[#allocation10 + $0x14] ss:$8 sps:$4 sm:$0xff]  }
 0x110   : > { %1247 = vmatprep.subr.bf16.mxu0 %v2642_v5  ;;  %v2670_v5 = vld [vmem:[#allocation10 + $0x10] ss:$8 sps:$4 sm:$0xff]  }
 0x112   : > { %977 = vmatpush1.bf16.msra.mxu1 %v2615_v52 }
 0x113   : > { %978 = vmatprep.subr.bf16.mxu1 %v2616_v53  ;;  %1248 = vmatpush1.bf16.msra.mxu0 %v2640_v6  ;;  %v2675_v6 = vld [vmem:[#allocation10 + $0x24] ss:$8 sps:$4 sm:$0xff]  }
 0x114   : > { %1249 = vmatprep.subr.bf16.mxu0 %v2645_v7  ;;  %v2673_v7 = vld [vmem:[#allocation10 + $0x20] ss:$8 sps:$4 sm:$0xff]  }
 0x116   : > { %979 = vmatpush1.bf16.msra.mxu1 %v2618_v54 }
 0x117   : > { %1250 = vmatpush1.bf16.msra.mxu0 %v2643_v8  ;;  %1518 = vmatprep.subr.bf16.mxu1 %v2669_v3  ;;  %v2678_v8 = vld [vmem:[#allocation10 + $0x34] ss:$8 sps:$4 sm:$0xff]  }
 0x118   : > { %1251 = vmatprep.subr.bf16.mxu0 %v2648_v9  ;;  %v2676_v9 = vld [vmem:[#allocation10 + $0x30] ss:$8 sps:$4 sm:$0xff]  }
 0x11b   : > { %1252 = vmatpush1.bf16.msra.mxu0 %v2646_v10  ;;  %v2681_v10 = vld [vmem:[#allocation10 + $0x44] ss:$8 sps:$4 sm:$0xff]  }
 0x11c   : > { %1253 = vmatprep.subr.bf16.mxu0 %v2651_v11  ;;  %v2679_v11 = vld [vmem:[#allocation10 + $0x40] ss:$8 sps:$4 sm:$0xff]  }
 0x11f   : > { %1254 = vmatpush1.bf16.msra.mxu0 %v2649_v12  ;;  %v2684_v12 = vld [vmem:[#allocation10 + $0x54] ss:$8 sps:$4 sm:$0xff]  }
 0x120   : > { %1255 = vmatprep.subr.bf16.mxu0 %v2654_v13  ;;  %v2682_v13 = vld [vmem:[#allocation10 + $0x50] ss:$8 sps:$4 sm:$0xff]  }
 0x123   : > { %1256 = vmatpush1.bf16.msra.mxu0 %v2652_v14  ;;  %v2687_v14 = vld [vmem:[#allocation10 + $0x64] ss:$8 sps:$4 sm:$0xff]  }
 0x124   : > { %1257 = vmatprep.subr.bf16.mxu0 %v2657_v15  ;;  %v2685_v15 = vld [vmem:[#allocation10 + $0x60] ss:$8 sps:$4 sm:$0xff]  }
 0x127   : > { %1258 = vmatpush1.bf16.msra.mxu0 %v2655_v16  ;;  %v2690_v16 = vld [vmem:[#allocation10 + $0x74] ss:$8 sps:$4 sm:$0xff]  }
 0x128   : > { %1259 = vmatprep.subr.bf16.mxu0 %v2660_v60 }
 0x12b   : > { %1260 = vmatpush1.bf16.msra.mxu0 %v2658_v61 }
 0x12c   : > { %1261 = vmatprep.subr.bf16.mxu0 %v2663_v62 }
 0x12f   : > { %1262 = vmatpush1.bf16.msra.mxu0 %v2661_v63 }
 0x130   : > { %1263 = vmatprep.subr.bf16.mxu0 %v2666_v0 }
 0x133   : > { %1264 = vmatpush1.bf16.msra.mxu0 %v2664_v1 }
 0x1c8   : > { %v697_v24 = vpop.f32.mrb[0].mxu0 }
 0x1c9   : > { %v698_v25 = vadd.f32 %v697_v24, %v576_v22  ;;  %v699_v26 = vpop.f32.mrb[1].mxu0  ;;  %v2699_v24 = vld [vmem:[#allocation10 + $0xa4] ss:$8 sps:$4 sm:$0xff]  }
 0x1ca   : > { %v700_v27 = vadd.f32 %v699_v26, %v580_v23  ;;  %v701_v28 = vpop.f32.mrb[2].mxu0  ;;  %v2702_v26 = vld [vmem:[#allocation10 + $0xb4] ss:$8 sps:$4 sm:$0xff]  }
 0x1cb   : > { %v724_v29 = vmul.f32 0.01, %v698_v25  ;;  %v702_v30 = vadd.f32 %v701_v28, %v576_v22  ;;  %v703_v31 = vpop.f32.mrb[3].mxu0  ;;  %vm716_vm0 = vcmp.gt.f32.partialorder %v698_v25, 0.0  ;;  %v2705_v28 = vld [vmem:[#allocation10 + $0xc4] ss:$8 sps:$4 sm:$0xff]  }
 0x1cc   : > { %v725_v32 = vmul.f32 0.01, %v700_v27  ;;  %v704_v33 = vadd.f32 %v703_v31, %v580_v23  ;;  %vm717_vm2 = vcmp.gt.f32.partialorder %v700_v27, 0.0 }
 0x1cd   : > { %vm718_vm1 = vcmp.gt.f32.partialorder %v702_v30, 0.0  ;;  %v726_v34 = vmul.f32 0.01, %v702_v30  ;;  %v732_v36 = vsel %vm716_vm0, %v698_v25, %v724_v29  ;;  %v2697_v25 = vld [vmem:[#allocation10 + $0xa0] ss:$8 sps:$4 sm:$0xff]  }
 0x1ce   : > { %v727_v35 = vmul.f32 0.01, %v704_v33  ;;  %vm719_vm3 = vcmp.gt.f32.partialorder %v704_v33, 0.0  ;;  %v733_v39 = vsel %vm717_vm2, %v700_v27, %v725_v32  ;;  %v2700_v27 = vld [vmem:[#allocation10 + $0xb0] ss:$8 sps:$4 sm:$0xff]  }
 0x1cf   : > { %v734_v37 = vsel %vm718_vm1, %v702_v30, %v726_v34  ;;  %v2703_v29 = vld [vmem:[#allocation10 + $0xc0] ss:$8 sps:$4 sm:$0xff]  }
 0x1d0   : > { %v707_v38 = vpop.f32.mrb[4].mxu0  ;;  %v735_v40 = vsel %vm719_vm3, %v704_v33, %v727_v35  ;;  %v740_v41 = vpack.c.bf16 %v734_v37, %v732_v36  ;;  %v776_v30 = vld [vmem:[%s3533_s4] sm:$0x3] }
 0x1d1   : > { %v708_v42 = vadd.f32 %v707_v38, %v576_v22  ;;  %v709_v43 = vpop.f32.mrb[5].mxu0  ;;  %v741_v44 = vpack.c.bf16 %v735_v40, %v733_v39  ;;  %v781_v31 = vrot.slane %v776_v30, %v3445_v19  ;;  %v785_v32 = vrot.slane %v776_v30, %v3450_v21  ;;  %v2739_v30 = vld [vmem:[#allocation11 + $0x80] ss:$8 sps:$4 sm:$0xff]  }
 0x1d2   : > { %v710_v45 = vadd.f32 %v709_v43, %v580_v23  ;;  %v711_v46 = vpop.f32.mrb[6].mxu0 }
 0x1d3   : > { %v728_v47 = vmul.f32 0.01, %v708_v42  ;;  %v712_v48 = vadd.f32 %v711_v46, %v576_v22  ;;  %v713_v49 = vpop.f32.mrb[7].mxu0  ;;  %980 = vmatprep.mubr.bf16.mxu1 %v741_v44  ;;  %vm720_vm4 = vcmp.gt.f32.partialorder %v708_v42, 0.0  ;;  %v2696_v22 = vld [vmem:[#allocation10 + $0x94] ss:$8 sps:$4 sm:$0xff]  }
 0x1d4   : > { %v729_v50 = vmul.f32 0.01, %v710_v45  ;;  %v714_v51 = vadd.f32 %v713_v49, %v580_v23  ;;  %981 = vmatmul.mubr.bf16.vlgmr.msra.gmra.mrb[0].mxu1 %v740_v41  ;;  %vm721_vm5 = vcmp.gt.f32.partialorder %v710_v45, 0.0  ;;  %v2694_v23 = vld [vmem:[#allocation10 + $0x90] ss:$8 sps:$4 sm:$0xff]  }
 0x1d5   : > { %vm722_vm6 = vcmp.gt.f32.partialorder %v712_v48, 0.0  ;;  %v730_v52 = vmul.f32 0.01, %v712_v48  ;;  %v736_v54 = vsel %vm720_vm4, %v708_v42, %v728_v47  ;;  %1519 = vmatpush1.bf16.msra.mxu1 %v2667_v2 }
 0x1d6   : > { %vm723_vm7 = vcmp.gt.f32.partialorder %v714_v51, 0.0  ;;  %v731_v53 = vmul.f32 0.01, %v714_v51  ;;  %v737_v56 = vsel %vm721_vm5, %v710_v45, %v729_v50  ;;  %1520 = vmatprep.subr.bf16.mxu1 %v2672_v4 }
 0x1d7   : > { %v738_v55 = vsel %vm722_vm6, %v712_v48, %v730_v52 }
 0x1d8   : > { %v739_v57 = vsel %vm723_vm7, %v714_v51, %v731_v53  ;;  %v742_v58 = vpack.c.bf16 %v738_v55, %v736_v54 }
 0x1d9   : > { %v743_v59 = vpack.c.bf16 %v739_v57, %v737_v56  ;;  %1521 = vmatpush1.bf16.msra.mxu1 %v2670_v5  ;;  %v2708_v5 = vld [vmem:[#allocation10 + $0xd4] ss:$8 sps:$4 sm:$0xff]  }
 0x1da   : > { %1522 = vmatprep.subr.bf16.mxu1 %v2675_v6  ;;  %v2706_v6 = vld [vmem:[#allocation10 + $0xd0] ss:$8 sps:$4 sm:$0xff]  }
 0x1db   : > { %990 = vmatprep.mubr.bf16.mxu1 %v743_v59 }
 0x1dc   : > { %991 = vmatmul.mubr.bf16.gmra.mrb[4].mxu1 %v742_v58 }
 0x1dd   : > { %1523 = vmatpush1.bf16.msra.mxu1 %v2673_v7  ;;  %v2711_v7 = vld [vmem:[#allocation10 + $0xe4] ss:$8 sps:$4 sm:$0xff]  }
 0x1de   : > { %1524 = vmatprep.subr.bf16.mxu1 %v2678_v8  ;;  %v2709_v8 = vld [vmem:[#allocation10 + $0xe0] ss:$8 sps:$4 sm:$0xff]  }
 0x1e1   : > { %1525 = vmatpush1.bf16.msra.mxu1 %v2676_v9  ;;  %v2714_v9 = vld [vmem:[#allocation10 + $0xf4] ss:$8 sps:$4 sm:$0xff]  }
 0x1e2   : > { %1526 = vmatprep.subr.bf16.mxu1 %v2681_v10  ;;  %v2712_v10 = vld [vmem:[#allocation10 + $0xf0] ss:$8 sps:$4 sm:$0xff]  }
 0x1e5   : > { %1527 = vmatpush1.bf16.msra.mxu1 %v2679_v11  ;;  %v2715_v11 = vld [vmem:[#allocation11] ss:$8 sps:$4 sm:$0xff]  }
 0x1e6   : > { %1528 = vmatprep.subr.bf16.mxu1 %v2684_v12  ;;  %v2717_v12 = vld [vmem:[#allocation11 + $0x4] ss:$8 sps:$4 sm:$0xff]  }
 0x1e7   : > { %1803 = vmatprep.subr.bf16.mxu0 %v2717_v12 }
 0x1e9   : > { %1529 = vmatpush1.bf16.msra.mxu1 %v2682_v13  ;;  %v2720_v13 = vld [vmem:[#allocation11 + $0x14] ss:$8 sps:$4 sm:$0xff]  }
 0x1ea   : > { %1530 = vmatprep.subr.bf16.mxu1 %v2687_v14  ;;  %v2718_v14 = vld [vmem:[#allocation11 + $0x10] ss:$8 sps:$4 sm:$0xff]  }
 0x1ed   : > { %1531 = vmatpush1.bf16.msra.mxu1 %v2685_v15  ;;  %v2723_v15 = vld [vmem:[#allocation11 + $0x24] ss:$8 sps:$4 sm:$0xff]  }
 0x1ee   : > { %1532 = vmatprep.subr.bf16.mxu1 %v2690_v16  ;;  %v2721_v16 = vld [vmem:[#allocation11 + $0x20] ss:$8 sps:$4 sm:$0xff]  }
 0x1f1   : > { %1533 = vmatpush1.bf16.msra.mxu1 %v2688_v17  ;;  %v2726_v17 = vld [vmem:[#allocation11 + $0x34] ss:$8 sps:$4 sm:$0xff]  }
 0x1f2   : > { %1534 = vmatprep.subr.bf16.mxu1 %v2693_v18  ;;  %v2724_v18 = vld [vmem:[#allocation11 + $0x30] ss:$8 sps:$4 sm:$0xff]  }
 0x1f5   : > { %1535 = vmatpush1.bf16.msra.mxu1 %v2691_v20  ;;  %v2729_v20 = vld [vmem:[#allocation11 + $0x44] ss:$8 sps:$4 sm:$0xff]  }
 0x1f6   : > { %1536 = vmatprep.subr.bf16.mxu1 %v2696_v22  ;;  %v2727_v22 = vld [vmem:[#allocation11 + $0x40] ss:$8 sps:$4 sm:$0xff]  }
 0x1f9   : > { %1537 = vmatpush1.bf16.msra.mxu1 %v2694_v23  ;;  %v2732_v23 = vld [vmem:[#allocation11 + $0x54] ss:$8 sps:$4 sm:$0xff]  }
 0x1fa   : > { %1538 = vmatprep.subr.bf16.mxu1 %v2699_v24  ;;  %v2730_v24 = vld [vmem:[#allocation11 + $0x50] ss:$8 sps:$4 sm:$0xff]  }
 0x1fd   : > { %1539 = vmatpush1.bf16.msra.mxu1 %v2697_v25  ;;  %v2735_v25 = vld [vmem:[#allocation11 + $0x64] ss:$8 sps:$4 sm:$0xff]  }
 0x1fe   : > { %1540 = vmatprep.subr.bf16.mxu1 %v2702_v26  ;;  %v2733_v26 = vld [vmem:[#allocation11 + $0x60] ss:$8 sps:$4 sm:$0xff]  }
 0x201   : > { %1541 = vmatpush1.bf16.msra.mxu1 %v2700_v27  ;;  %v2738_v27 = vld [vmem:[#allocation11 + $0x74] ss:$8 sps:$4 sm:$0xff]  }
 0x202   : > { %1542 = vmatprep.subr.bf16.mxu1 %v2705_v28  ;;  %v2736_v28 = vld [vmem:[#allocation11 + $0x70] ss:$8 sps:$4 sm:$0xff]  }
 0x205   : > { %1543 = vmatpush1.bf16.msra.mxu1 %v2703_v29  ;;  %v2741_v29 = vld [vmem:[#allocation11 + $0x84] ss:$8 sps:$4 sm:$0xff]  }
 0x206   : > { %1544 = vmatprep.subr.bf16.mxu1 %v2708_v5 }
 0x209   : > { %1545 = vmatpush1.bf16.msra.mxu1 %v2706_v6 }
 0x20a   : > { %1546 = vmatprep.subr.bf16.mxu1 %v2711_v7 }
 0x20d   : > { %1547 = vmatpush1.bf16.msra.mxu1 %v2709_v8 }
 0x20e   : > { %1548 = vmatprep.subr.bf16.mxu1 %v2714_v9 }
 0x211   : > { %1549 = vmatpush1.bf16.msra.mxu1 %v2712_v10 }
 0x2a7   : > { %v982_v33 = vpop.f32.mrb[0].mxu1 }
 0x2a8   : > { %v983_v34 = vadd.f32 %v982_v33, %v781_v31  ;;  %v984_v35 = vpop.f32.mrb[1].mxu1  ;;  %v2747_v33 = vld [vmem:[#allocation11 + $0xa4] ss:$8 sps:$4 sm:$0xff]  }
 0x2a9   : > { %v985_v36 = vadd.f32 %v984_v35, %v785_v32  ;;  %v986_v37 = vpop.f32.mrb[2].mxu1  ;;  %v2750_v35 = vld [vmem:[#allocation11 + $0xb4] ss:$8 sps:$4 sm:$0xff]  }
 0x2aa   : > { %v1009_v38 = vmul.f32 0.01, %v983_v34  ;;  %v987_v39 = vadd.f32 %v986_v37, %v781_v31  ;;  %v988_v40 = vpop.f32.mrb[3].mxu1  ;;  %vm1001_vm8 = vcmp.gt.f32.partialorder %v983_v34, 0.0  ;;  %v2753_v37 = vld [vmem:[#allocation11 + $0xc4] ss:$8 sps:$4 sm:$0xff]  }
 0x2ab   : > { %v1010_v41 = vmul.f32 0.01, %v985_v36  ;;  %v989_v42 = vadd.f32 %v988_v40, %v785_v32  ;;  %vm1002_vm9 = vcmp.gt.f32.partialorder %v985_v36, 0.0 }
 0x2ac   : > { %vm1003_vm10 = vcmp.gt.f32.partialorder %v987_v39, 0.0  ;;  %v1011_v43 = vmul.f32 0.01, %v987_v39  ;;  %v1017_v45 = vsel %vm1001_vm8, %v983_v34, %v1009_v38  ;;  %v2745_v34 = vld [vmem:[#allocation11 + $0xa0] ss:$8 sps:$4 sm:$0xff]  }
 0x2ad   : > { %vm1004_vm11 = vcmp.gt.f32.partialorder %v989_v42, 0.0  ;;  %v1012_v44 = vmul.f32 0.01, %v989_v42  ;;  %v1018_v49 = vsel %vm1002_vm9, %v985_v36, %v1010_v41  ;;  %v2748_v36 = vld [vmem:[#allocation11 + $0xb0] ss:$8 sps:$4 sm:$0xff]  }
 0x2ae   : > { %v1019_v46 = vsel %vm1003_vm10, %v987_v39, %v1011_v43  ;;  %v2751_v38 = vld [vmem:[#allocation11 + $0xc0] ss:$8 sps:$4 sm:$0xff]  }
 0x2af   : > { %v1025_v47 = vpack.c.bf16 %v1019_v46, %v1017_v45  ;;  %v992_v48 = vpop.f32.mrb[4].mxu1  ;;  %v1020_v50 = vsel %vm1004_vm11, %v989_v42, %v1012_v44  ;;  %v1061_v39 = vld [vmem:[%s3572_s23] sm:$0x3]  ;;  %s2404_s23 = sshll.u32 %s3163_s14, 9  ;;  %s3069_s14 = smov [#allocation14]  }
 0x2b0   : > { %v993_v51 = vadd.f32 %v992_v48, %v781_v31  ;;  %v994_v52 = vpop.f32.mrb[5].mxu1  ;;  %v1026_v53 = vpack.c.bf16 %v1020_v50, %v1018_v49  ;;  %v1066_v40 = vrot.slane %v1061_v39, %v3445_v19  ;;  %v1070_v41 = vrot.slane %v1061_v39, %v3450_v21 }
 0x2b1   : > { %v995_v54 = vadd.f32 %v994_v52, %v785_v32  ;;  %v996_v55 = vpop.f32.mrb[6].mxu1 }
 0x2b2   : > { %v1013_v56 = vmul.f32 0.01, %v993_v51  ;;  %v997_v57 = vadd.f32 %v996_v55, %v781_v31  ;;  %v998_v58 = vpop.f32.mrb[7].mxu1  ;;  %1265 = vmatprep.mubr.bf16.mxu0 %v1026_v53  ;;  %vm1005_vm12 = vcmp.gt.f32.partialorder %v993_v51, 0.0  ;;  %v2744_v31 = vld [vmem:[#allocation11 + $0x94] ss:$8 sps:$4 sm:$0xff]  }
 0x2b3   : > { %v1014_v59 = vmul.f32 0.01, %v995_v54  ;;  %v999_v60 = vadd.f32 %v998_v58, %v785_v32  ;;  %1266 = vmatmul.mubr.bf16.vlgmr.msra.gmra.mrb[8].mxu0 %v1025_v47  ;;  %vm1006_vm13 = vcmp.gt.f32.partialorder %v995_v54, 0.0  ;;  %v2742_v32 = vld [vmem:[#allocation11 + $0x90] ss:$8 sps:$4 sm:$0xff]  }
 0x2b4   : > { %vm1007_vm14 = vcmp.gt.f32.partialorder %v997_v57, 0.0  ;;  %v1015_v61 = vmul.f32 0.01, %v997_v57  ;;  %v1021_v63 = vsel %vm1005_vm12, %v993_v51, %v1013_v56  ;;  %1804 = vmatpush1.bf16.msra.mxu0 %v2715_v11 }
 0x2b5   : > { %vm1008_vm15 = vcmp.gt.f32.partialorder %v999_v60, 0.0  ;;  %v1016_v62 = vmul.f32 0.01, %v999_v60  ;;  %v1022_v1 = vsel %vm1006_vm13, %v995_v54, %v1014_v59  ;;  %1805 = vmatprep.subr.bf16.mxu0 %v2720_v13 }
 0x2b6   : > { %v1023_v0 = vsel %vm1007_vm14, %v997_v57, %v1015_v61 }
 0x2b7   : > { %v1024_v2 = vsel %vm1008_vm15, %v999_v60, %v1016_v62  ;;  %v1027_v3 = vpack.c.bf16 %v1023_v0, %v1021_v63 }
 0x2b8   : > { %v1028_v4 = vpack.c.bf16 %v1024_v2, %v1022_v1  ;;  %1806 = vmatpush1.bf16.msra.mxu0 %v2718_v14  ;;  %v2756_v14 = vld [vmem:[#allocation11 + $0xd4] ss:$8 sps:$4 sm:$0xff]  }
 0x2b9   : > { %1807 = vmatprep.subr.bf16.mxu0 %v2723_v15  ;;  %v2754_v15 = vld [vmem:[#allocation11 + $0xd0] ss:$8 sps:$4 sm:$0xff]  }
 0x2ba   : > { %1275 = vmatprep.mubr.bf16.mxu0 %v1028_v4 }
 0x2bb   : > { %1276 = vmatmul.mubr.bf16.gmra.mrb[12].mxu0 %v1027_v3 }
 0x2bc   : > { %1808 = vmatpush1.bf16.msra.mxu0 %v2721_v16  ;;  %v2759_v16 = vld [vmem:[#allocation11 + $0xe4] ss:$8 sps:$4 sm:$0xff]  }
 0x2bd   : > { %1809 = vmatprep.subr.bf16.mxu0 %v2726_v17  ;;  %v2757_v17 = vld [vmem:[#allocation11 + $0xe0] ss:$8 sps:$4 sm:$0xff]  }
 0x2c0   : > { %1810 = vmatpush1.bf16.msra.mxu0 %v2724_v18  ;;  %v2762_v18 = vld [vmem:[#allocation11 + $0xf4] ss:$8 sps:$4 sm:$0xff]  }
 0x2c1   : > { %1811 = vmatprep.subr.bf16.mxu0 %v2729_v20  ;;  %v2760_v20 = vld [vmem:[#allocation11 + $0xf0] ss:$8 sps:$4 sm:$0xff]  }
 0x2c4   : > { %1812 = vmatpush1.bf16.msra.mxu0 %v2727_v22  ;;  %v2763_v22 = vld [vmem:[#allocation13 + $0x40] sm:$0xff]  }
 0x2c5   : > { %1813 = vmatprep.subr.bf16.mxu0 %v2732_v23  ;;  %v2764_v23 = vld [vmem:[#allocation13] sm:$0xff]   ;;  %2405 = vmatprep.subr.bf16.mxu1 %v2763_v22 }
 0x2c8   : > { %1814 = vmatpush1.bf16.msra.mxu0 %v2730_v24  ;;  %v2765_v24 = vld [vmem:[#allocation13 + $0x48] sm:$0xff]  }
 0x2c9   : > { %1815 = vmatprep.subr.bf16.mxu0 %v2735_v25  ;;  %v2766_v25 = vld [vmem:[#allocation13 + $0x8] sm:$0xff]  }
 0x2cc   : > { %1816 = vmatpush1.bf16.msra.mxu0 %v2733_v26  ;;  %v2767_v26 = vld [vmem:[#allocation13 + $0x50] sm:$0xff]  }
 0x2cd   : > { %1817 = vmatprep.subr.bf16.mxu0 %v2738_v27  ;;  %v2768_v27 = vld [vmem:[#allocation13 + $0x10] sm:$0xff]  }
 0x2d0   : > { %1818 = vmatpush1.bf16.msra.mxu0 %v2736_v28  ;;  %v2769_v28 = vld [vmem:[#allocation13 + $0x58] sm:$0xff]  }
 0x2d1   : > { %1819 = vmatprep.subr.bf16.mxu0 %v2741_v29  ;;  %v2770_v29 = vld [vmem:[#allocation13 + $0x18] sm:$0xff]  }
 0x2d4   : > { %1820 = vmatpush1.bf16.msra.mxu0 %v2739_v30  ;;  %v2771_v30 = vld [vmem:[#allocation13 + $0x60] sm:$0xff]  }
 0x2d5   : > { %1821 = vmatprep.subr.bf16.mxu0 %v2744_v31  ;;  %v2772_v31 = vld [vmem:[#allocation13 + $0x20] sm:$0xff]  }
 0x2d8   : > { %1822 = vmatpush1.bf16.msra.mxu0 %v2742_v32  ;;  %v1346_v32 = vld [vmem:[%s3573_s16] sm:$0x3]  ;;  %s3485_s16 = scalar_lea.hbm %s3576_s10, %s2404_s23 }
 0x2d9   : > { %1823 = vmatprep.subr.bf16.mxu0 %v2747_v33  ;;  %v1351_v33 = vrot.slane %v1346_v32, %v3445_v19 }
 0x2dc   : > { %1824 = vmatpush1.bf16.msra.mxu0 %v2745_v34  ;;  %v1355_v34 = vrot.slane %v1346_v32, %v3450_v21 }
 0x2dd   : > { %1825 = vmatprep.subr.bf16.mxu0 %v2750_v35 }
 0x2e0   : > { %1826 = vmatpush1.bf16.msra.mxu0 %v2748_v36 }
 0x2e1   : > { %1827 = vmatprep.subr.bf16.mxu0 %v2753_v37 }
 0x2e4   : > { %1828 = vmatpush1.bf16.msra.mxu0 %v2751_v38 }
 0x2e5   : > { %1829 = vmatprep.subr.bf16.mxu0 %v2756_v14 }
 0x2e8   : > { %1830 = vmatpush1.bf16.msra.mxu0 %v2754_v15 }
 0x2e9   : > { %1831 = vmatprep.subr.bf16.mxu0 %v2759_v16 }
 0x2ec   : > { %1832 = vmatpush1.bf16.msra.mxu0 %v2757_v17 }
 0x2ed   : > { %1833 = vmatprep.subr.bf16.mxu0 %v2762_v18 }
 0x2f0   : > { %1834 = vmatpush1.bf16.msra.mxu0 %v2760_v20 }
 0x386   : > { %v1267_v42 = vpop.f32.mrb[8].mxu0 }
 0x387   : > { %v1268_v43 = vadd.f32 %v1267_v42, %v1066_v40  ;;  %v1269_v44 = vpop.f32.mrb[9].mxu0 }
 0x388   : > { %v1270_v45 = vadd.f32 %v1269_v44, %v1070_v41  ;;  %v1271_v46 = vpop.f32.mrb[10].mxu0 }
 0x389   : > { %v1294_v47 = vmul.f32 0.01, %v1268_v43  ;;  %v1272_v48 = vadd.f32 %v1271_v46, %v1066_v40  ;;  %v1273_v49 = vpop.f32.mrb[11].mxu0  ;;  %vm1286_vm0 = vcmp.gt.f32.partialorder %v1268_v43, 0.0 }
 0x38a   : > { %v1295_v50 = vmul.f32 0.01, %v1270_v45  ;;  %v1274_v51 = vadd.f32 %v1273_v49, %v1070_v41  ;;  %vm1287_vm1 = vcmp.gt.f32.partialorder %v1270_v45, 0.0 }
 0x38b   : > { %vm1288_vm2 = vcmp.gt.f32.partialorder %v1272_v48, 0.0  ;;  %v1296_v52 = vmul.f32 0.01, %v1272_v48  ;;  %v1302_v54 = vsel %vm1286_vm0, %v1268_v43, %v1294_v47 }
 0x38c   : > { %vm1289_vm3 = vcmp.gt.f32.partialorder %v1274_v51, 0.0  ;;  %v1297_v53 = vmul.f32 0.01, %v1274_v51  ;;  %v1303_v58 = vsel %vm1287_vm1, %v1270_v45, %v1295_v50 }
 0x38d   : > { %v1304_v55 = vsel %vm1288_vm2, %v1272_v48, %v1296_v52 }
 0x38e   : > { %v1310_v56 = vpack.c.bf16 %v1304_v55, %v1302_v54  ;;  %v1277_v57 = vpop.f32.mrb[12].mxu0  ;;  %v1305_v59 = vsel %vm1289_vm3, %v1274_v51, %v1297_v53 }
 0x38f   : > { %v1278_v60 = vadd.f32 %v1277_v57, %v1066_v40  ;;  %v1279_v61 = vpop.f32.mrb[13].mxu0  ;;  %v1311_v62 = vpack.c.bf16 %v1305_v59, %v1303_v58 }
 0x390   : > { %v1280_v63 = vadd.f32 %v1279_v61, %v1070_v41  ;;  %v1281_v0 = vpop.f32.mrb[14].mxu0 }
 0x391   : > { %v1298_v1 = vmul.f32 0.01, %v1278_v60  ;;  %v1282_v2 = vadd.f32 %v1281_v0, %v1066_v40  ;;  %v1283_v3 = vpop.f32.mrb[15].mxu0  ;;  %1550 = vmatprep.mubr.bf16.mxu1 %v1311_v62  ;;  %vm1290_vm4 = vcmp.gt.f32.partialorder %v1278_v60, 0.0 }
 0x392   : > { %v1299_v4 = vmul.f32 0.01, %v1280_v63  ;;  %v1284_v5 = vadd.f32 %v1283_v3, %v1070_v41  ;;  %1551 = vmatmul.mubr.bf16.vlgmr.msra.gmra.mrb[8].mxu1 %v1310_v56  ;;  %vm1291_vm5 = vcmp.gt.f32.partialorder %v1280_v63, 0.0 }
 0x393   : > { %vm1292_vm6 = vcmp.gt.f32.partialorder %v1282_v2, 0.0  ;;  %v1300_v6 = vmul.f32 0.01, %v1282_v2  ;;  %v1306_v8 = vsel %vm1290_vm4, %v1278_v60, %v1298_v1  ;;  %2406 = vmatpush3.bf16.msra.mxu1 %v2764_v23 }
 0x394   : > { %vm1293_vm7 = vcmp.gt.f32.partialorder %v1284_v5, 0.0  ;;  %v1301_v7 = vmul.f32 0.01, %v1284_v5  ;;  %v1307_v10 = vsel %vm1291_vm5, %v1280_v63, %v1299_v4  ;;  %2407 = vmatprep.subr.bf16.mxu1 %v2765_v24 }
 0x395   : > { %v1308_v9 = vsel %vm1292_vm6, %v1282_v2, %v1300_v6 }
 0x396   : > { %v1309_v11 = vsel %vm1293_vm7, %v1284_v5, %v1301_v7  ;;  %v1312_v12 = vpack.c.bf16 %v1308_v9, %v1306_v8  ;;  %v2773_v7 = vld [vmem:[#allocation13 + $0x68] sm:$0xff]   ;;  %v2775_v9 = vld [vmem:[#allocation13 + $0x70] sm:$0xff]  }
 0x397   : > { %v1313_v13 = vpack.c.bf16 %v1309_v11, %v1307_v10  ;;  %2408 = vmatpush3.bf16.msra.mxu1 %v2766_v25  ;;  %v2774_v8 = vld [vmem:[#allocation13 + $0x28] sm:$0xff]   ;;  %v2776_v10 = vld [vmem:[#allocation13 + $0x30] sm:$0xff]   ;;  %v2777_v11 = vld [vmem:[#allocation13 + $0x78] sm:$0xff]  }
 0x398   : > { %2409 = vmatprep.subr.bf16.mxu1 %v2767_v26 }
 0x399   : > { %1560 = vmatprep.mubr.bf16.mxu1 %v1313_v13  ;;  %v1631_v13 = vld [vmem:[%s3574_s15] sm:$0x3]  ;;  %s2981_s15 = sshll.u32 %s3069_s14, 4  ;;  %s2982_s15 = int_to_ptr.vmem [resolvable:$false] %s2981_s15 }
 0x39a   : > { %1561 = vmatmul.mubr.bf16.gmra.mrb[12].mxu1 %v1312_v12  ;;  %v2778_v12 = vld [vmem:[#allocation13 + $0x38] sm:$0xff]   ;;  %v1636_v14 = vrot.slane %v1631_v13, %v3445_v19  ;;  %v1640_v15 = vrot.slane %v1631_v13, %v3450_v21  ;;  %s2983_s22 = scalar_lea.vmem %s2982_s15, 1024  ;;  %p2984_p13 = scmp.lt.s32.totalorder %s3480_s12, %s2982_s15 }
 0x39b   : > { %2410 = vmatpush3.bf16.msra.mxu1 %v2768_v27  ;;  %p2985_p0 = scmp.lt.s32.totalorder %s2983_s22, %s2977_s24 }
 0x39c   : > { %2411 = vmatprep.subr.bf16.mxu1 %v2769_v28 }
 0x39d   : > { %p2986_p2 = por %p2985_p0, %p2984_p13 }
 0x39f   : > { %2412 = vmatpush3.bf16.msra.mxu1 %v2770_v29  ;;  %p2987_p8 = pnand %p2986_p2, %p2980_p1 }
 0x3a0   : > { %2413 = vmatprep.subr.bf16.mxu1 %v2771_v30 }
 0x3a3   : > { %2414 = vmatpush3.bf16.msra.mxu1 %v2772_v31 }
 0x3a4   : > { %2415 = vmatprep.subr.bf16.mxu1 %v2773_v7 }
 0x3a7   : > { %2416 = vmatpush3.bf16.msra.mxu1 %v2774_v8 }
 0x3a8   : > { %2417 = vmatprep.subr.bf16.mxu1 %v2775_v9 }
 0x3ab   : > { %2418 = vmatpush3.bf16.msra.mxu1 %v2776_v10 }
 0x3ac   : > { %2419 = vmatprep.subr.bf16.mxu1 %v2777_v11 }
 0x3af   : > { %2420 = vmatpush3.bf16.msra.mxu1 %v2778_v12 }
 0x465   : > { %v1552_v35 = vpop.f32.mrb[8].mxu1 }
 0x466   : > { %v1553_v36 = vadd.f32 %v1552_v35, %v1351_v33  ;;  %v1554_v37 = vpop.f32.mrb[9].mxu1 }
 0x467   : > { %v1555_v38 = vadd.f32 %v1554_v37, %v1355_v34  ;;  %v1556_v39 = vpop.f32.mrb[10].mxu1 }
 0x468   : > { %v1579_v40 = vmul.f32 0.01, %v1553_v36  ;;  %v1557_v41 = vadd.f32 %v1556_v39, %v1351_v33  ;;  %v1558_v42 = vpop.f32.mrb[11].mxu1  ;;  %vm1571_vm8 = vcmp.gt.f32.partialorder %v1553_v36, 0.0 }
 0x469   : > { %v1580_v43 = vmul.f32 0.01, %v1555_v38  ;;  %v1559_v44 = vadd.f32 %v1558_v42, %v1355_v34  ;;  %vm1572_vm9 = vcmp.gt.f32.partialorder %v1555_v38, 0.0 }
 0x46a   : > { %vm1573_vm10 = vcmp.gt.f32.partialorder %v1557_v41, 0.0  ;;  %v1581_v45 = vmul.f32 0.01, %v1557_v41  ;;  %v1587_v47 = vsel %vm1571_vm8, %v1553_v36, %v1579_v40 }
 0x46b   : > { %vm1574_vm11 = vcmp.gt.f32.partialorder %v1559_v44, 0.0  ;;  %v1582_v46 = vmul.f32 0.01, %v1559_v44  ;;  %v1588_v51 = vsel %vm1572_vm9, %v1555_v38, %v1580_v43 }
 0x46c   : > { %v1589_v48 = vsel %vm1573_vm10, %v1557_v41, %v1581_v45 }
 0x46d   : > { %v1595_v49 = vpack.c.bf16 %v1589_v48, %v1587_v47  ;;  %v1562_v50 = vpop.f32.mrb[12].mxu1  ;;  %v1590_v52 = vsel %vm1574_vm11, %v1559_v44, %v1582_v46 }
 0x46e   : > { %v1563_v53 = vadd.f32 %v1562_v50, %v1351_v33  ;;  %v1564_v54 = vpop.f32.mrb[13].mxu1  ;;  %v1596_v55 = vpack.c.bf16 %v1590_v52, %v1588_v51 }
 0x46f   : > { %v1565_v56 = vadd.f32 %v1564_v54, %v1355_v34  ;;  %v1566_v57 = vpop.f32.mrb[14].mxu1 }
 0x470   : > { %v1583_v58 = vmul.f32 0.01, %v1563_v53  ;;  %v1567_v59 = vadd.f32 %v1566_v57, %v1351_v33  ;;  %v1568_v60 = vpop.f32.mrb[15].mxu1  ;;  %1835 = vmatprep.mubr.bf16.mxu0 %v1596_v55  ;;  %vm1575_vm12 = vcmp.gt.f32.partialorder %v1563_v53, 0.0 }
 0x471   : > { %v1584_v61 = vmul.f32 0.01, %v1565_v56  ;;  %v1569_v62 = vadd.f32 %v1568_v60, %v1355_v34  ;;  %1836 = vmatmul.mubr.bf16.vlgmr.msra.gmra.mrb[16].mxu0 %v1595_v49  ;;  %vm1576_vm13 = vcmp.gt.f32.partialorder %v1565_v56, 0.0 }
 0x472   : > { %vm1577_vm14 = vcmp.gt.f32.partialorder %v1567_v59, 0.0  ;;  %v1585_v63 = vmul.f32 0.01, %v1567_v59  ;;  %v1591_v1 = vsel %vm1575_vm12, %v1563_v53, %v1583_v58  ;;  %v2381_v53 = vld [vmem:[%s3575_s6] ss:$0 sm:$0xff] }
 0x473   : > { %vm1578_vm15 = vcmp.gt.f32.partialorder %v1569_v62, 0.0  ;;  %v1586_v0 = vmul.f32 0.01, %v1569_v62  ;;  %v1592_v3 = vsel %vm1576_vm13, %v1565_v56, %v1584_v61 }
 0x474   : > { %v1593_v2 = vsel %vm1577_vm14, %v1567_v59, %v1585_v63 }
 0x475   : > { %v1594_v4 = vsel %vm1578_vm15, %v1569_v62, %v1586_v0  ;;  %v1597_v5 = vpack.c.bf16 %v1593_v2, %v1591_v1 }
 0x476   : > { %v1598_v6 = vpack.c.bf16 %v1594_v4, %v1592_v3 }
 0x478   : > { %1845 = vmatprep.mubr.bf16.mxu0 %v1598_v6 }
 0x479   : > { %1846 = vmatmul.mubr.bf16.gmra.mrb[20].mxu0 %v1597_v5 }
 0x544   : > { %v1837_v16 = vpop.f32.mrb[16].mxu0 }
 0x545   : > { %v1838_v17 = vadd.f32 %v1837_v16, %v1636_v14  ;;  %v1839_v18 = vpop.f32.mrb[17].mxu0 }
 0x546   : > { %v1840_v20 = vadd.f32 %v1839_v18, %v1640_v15  ;;  %v1841_v22 = vpop.f32.mrb[18].mxu0 }
 0x547   : > { %v1864_v23 = vmul.f32 0.01, %v1838_v17  ;;  %v1842_v24 = vadd.f32 %v1841_v22, %v1636_v14  ;;  %v1843_v25 = vpop.f32.mrb[19].mxu0  ;;  %vm1856_vm0 = vcmp.gt.f32.partialorder %v1838_v17, 0.0 }
 0x548   : > { %v1865_v26 = vmul.f32 0.01, %v1840_v20  ;;  %v1844_v27 = vadd.f32 %v1843_v25, %v1640_v15  ;;  %vm1857_vm1 = vcmp.gt.f32.partialorder %v1840_v20, 0.0 }
 0x549   : > { %vm1858_vm2 = vcmp.gt.f32.partialorder %v1842_v24, 0.0  ;;  %v1866_v28 = vmul.f32 0.01, %v1842_v24  ;;  %v1872_v30 = vsel %vm1856_vm0, %v1838_v17, %v1864_v23 }
 0x54a   : > { %vm1859_vm3 = vcmp.gt.f32.partialorder %v1844_v27, 0.0  ;;  %v1867_v29 = vmul.f32 0.01, %v1844_v27  ;;  %v1873_v32 = vsel %vm1857_vm1, %v1840_v20, %v1865_v26 }
 0x54b   : > { %v1874_v19 = vsel %vm1858_vm2, %v1842_v24, %v1866_v28 }
 0x54c   : > { %v1880_v31 = vpack.c.bf16 %v1874_v19, %v1872_v30  ;;  %v1847_v21 = vpop.f32.mrb[20].mxu0  ;;  %v1875_v33 = vsel %vm1859_vm3, %v1844_v27, %v1867_v29 }
 0x54d   : > { %v1848_v34 = vadd.f32 %v1847_v21, %v1636_v14  ;;  %v1849_v35 = vpop.f32.mrb[21].mxu0  ;;  %v1881_v36 = vpack.c.bf16 %v1875_v33, %v1873_v32 }
 0x54e   : > { %v1850_v37 = vadd.f32 %v1849_v35, %v1640_v15  ;;  %v1851_v38 = vpop.f32.mrb[22].mxu0 }
 0x54f   : > { %v1868_v39 = vmul.f32 0.01, %v1848_v34  ;;  %v1852_v40 = vadd.f32 %v1851_v38, %v1636_v14  ;;  %v1853_v41 = vpop.f32.mrb[23].mxu0  ;;  %2051 = vmatprep.mubr.bf16.mxu1 %v1881_v36  ;;  %vm1860_vm4 = vcmp.gt.f32.partialorder %v1848_v34, 0.0 }
 0x550   : > { %v1869_v42 = vmul.f32 0.01, %v1850_v37  ;;  %v1854_v43 = vadd.f32 %v1853_v41, %v1640_v15  ;;  %2052 = vmatmul.mubr.bf16.vlgmr.msra.gmra.mrb[16].mxu1 %v1880_v31  ;;  %vm1861_vm5 = vcmp.gt.f32.partialorder %v1850_v37, 0.0 }
 0x551   : > { %vm1862_vm6 = vcmp.gt.f32.partialorder %v1852_v40, 0.0  ;;  %v1870_v44 = vmul.f32 0.01, %v1852_v40  ;;  %v1876_v46 = vsel %vm1860_vm4, %v1848_v34, %v1868_v39 }
 0x552   : > { %vm1863_vm7 = vcmp.gt.f32.partialorder %v1854_v43, 0.0  ;;  %v1871_v45 = vmul.f32 0.01, %v1854_v43  ;;  %v1877_v48 = vsel %vm1861_vm5, %v1850_v37, %v1869_v42 }
 0x553   : > { %v1878_v47 = vsel %vm1862_vm6, %v1852_v40, %v1870_v44 }
 0x554   : > { %v1879_v49 = vsel %vm1863_vm7, %v1854_v43, %v1871_v45  ;;  %v1882_v50 = vpack.c.bf16 %v1878_v47, %v1876_v46 }
 0x555   : > { %v1883_v51 = vpack.c.bf16 %v1879_v49, %v1877_v48 }
 0x557   : > { %2059 = vmatprep.mubr.bf16.mxu1 %v1883_v51 }
 0x558   : > { %2060 = vmatmul.mubr.bf16.gmra.mrb[20].mxu1 %v1882_v50 }
 0x623   : > { %v2421_v52 = vpop.f32.mrb[16].mxu1 }
 0x624   : > { %v2422_v54 = vpop.f32.mrb[17].mxu1 }
 0x625   : > { %v2423_v55 = vadd.f32 %v2422_v54, %v2421_v52  ;;  %v2424_v56 = vpop.f32.mrb[18].mxu1 }
 0x626   : > { %v2425_v57 = vpop.f32.mrb[19].mxu1 }
 0x627   : > { %v2054_v58 = vadd.f32 %v2423_v55, %v2381_v53  ;;  %v2426_v59 = vadd.f32 %v2425_v57, %v2424_v56 }
 0x629   : > { %2068 = vst [vmem:[%s545_s20] sm:$0xff] %v2054_v58  ;;  %v2057_v60 = vadd.f32 %v2426_v59, %v2381_v53 }
 0x62b   : > { %2069 = vst [vmem:[%s545_s20 + $0x8] sm:$0xff] %v2057_v60  ;;  %v2427_v61 = vpop.f32.mrb[20].mxu1 }
 0x62c   : > { %v2428_v62 = vpop.f32.mrb[21].mxu1 }
 0x62d   : > { %v2429_v63 = vadd.f32 %v2428_v62, %v2427_v61  ;;  %v2430_v0 = vpop.f32.mrb[22].mxu1 }
 0x62e   : > { %v2431_v1 = vpop.f32.mrb[23].mxu1 }
 0x62f   : > { %v2062_v2 = vadd.f32 %v2429_v63, %v2381_v53  ;;  %v2432_v3 = vadd.f32 %v2431_v1, %v2430_v0 }
 0x631   : > { %2070 = vst [vmem:[%s545_s20 + $0x10] sm:$0xff] %v2062_v2  ;;  %v2065_v4 = vadd.f32 %v2432_v3, %v2381_v53 }
 0x633   : > { %2071 = vst [vmem:[%s545_s20 + $0x18] sm:$0xff] %v2065_v4 }
 0x634   : > { %2990 = shalt.err (!%p2987_p8)
}
 0x635   : > { %s2991_s13 = scalar_lea.hbm %s3485_s16, 512  ;;  %s2995_s23 = scalar_lea.hbm %s3576_s10, 1024 }
 0x636   : > { %p2992_p4 = scmp.ne.s32.totalorder %s3485_s16, %s2991_s13  ;;  %p2996_p3 = scmp.lt.u32.totalorder %s3485_s16, %s3576_s10 }
 0x637   : > { %p2997_p5 = scmp.lt.u32.totalorder %s2995_s23, %s2991_s13  ;;  %p2999_p6 = scmp.lt.u32.totalorder %s2991_s13, %s3485_s16 }
 0x638   : > { %p2993_p10 = pnand %p2992_p4, %p3577_p9 }
 0x639   : > { %p2998_p7 = por %p2997_p5, %p2996_p3 }
 0x63a   : > { %p2994_p11 = pneg %p2993_p10 }
 0x63b   : > { %p3000_p12 = por %p2999_p6, %p2998_p7 }
 0x63d   : > { %p3001_p1 = pnand %p3000_p12, %p2994_p11 }
 0x63f   : > { %3004 = shalt.err (!%p3001_p1)
}
 0x640   : > { %s3070_s24 = smov 128   ;;  %s3071_s14 = smov 8  }
 0x641   : > { %2459 = dma.vmem_to_hbm [thread:$0]  (%p3577_p9), %s3480_s12, 512, %s3485_s16, %s2073_s19, %s3070_s24, %s3070_s24, %s3071_s14  }
 0x642 PF: > { %s2101_s15 = sand.u32 1, %s3043_s25   ;;  %p3578_p13 = scmp.ne.s32.totalorder %s3562_s17, 0 }
 0x643   : > { %p3579_p0 = scmp.ge.s32.totalorder %s3055_s28, 2  ;;  %s2102_s22 = scalar_lea.sflag [#allocation4], %s2101_s15 }
 0x645   : > { %p2485_p2 = pnand %p3579_p0, %p3578_p13 }
 0x647   : > { %3038 = dma.done.wait (!%p2485_p2), %s2102_s22, 512  }
 0x648   : > { %3040 = vsyncadd (!%p2485_p2), %s2102_s22, 4294966784  ;;  %p29_p8 = scmp.ge.s32.totalorder %s3333_s8, 4   ;;  %s3580_s25 = smov %s3047_s26 }
 0x649   : > { %s3581_s26 = smov %s3051_s27  ;;  %s3582_s27 = smov %s3344_s29 }
 0x64a   : > { %s3583_s28 = smov %s3333_s8  ;;  %31 = sbr.rel (!%p29_p8) target bundleno = 15 (0xf), region = 141 }
 0x651   :  { %2107 = vsyncpa [#allocation3], 1 }
 0x652   :  { %2109 = vsyncpa [#allocation3 + $0x1], 1 }
 0x653   :  { %2110 = vsyncpa [#allocation6], 1 }
 0x654   :  { %2111 = vsyncpa [#allocation9], 1 }
 0x655   :  { %2112 = vsyncpa [#allocation12], 1 }
 0x656   :  { %2113 = vsyncpa [#allocation4], 1 }
 0x657   :  { %2115 = vsyncpa [#allocation4 + $0x1], 1 }

</bundles_post_ra>
